<compile_context>
chip_gen: v7x
topology: tpu7x:2x2x1
jax: 0.10.0
libtpu: 0.0.40
codegen_flags: <defaults>
</compile_context>

<pallas_src>
import jax
import jax.numpy as jnp
from jax.experimental import pallas as pl
from jax.experimental.pallas import tpu as pltpu

_LANE = 128


def _round_up(x: int, m: int) -> int:
    return max(m, ((x + m - 1) // m) * m)


def _vmem_budget_bytes() -> int:
    """~70-80% of this generation's physical VMEM (fallback: v7x-safe 64 MiB)."""
    try:
        cap = int(pltpu.get_tpu_info().vmem_capacity_bytes)
    except Exception:
        cap = 64 * 1024 * 1024
    frac = 0.70 if cap <= 96 * 1024 * 1024 else 0.80
    return int(cap * frac)


def _choose_row_tile(H, W, Cp, Cmp, abytes, budget, B):
    """Largest divisor of H whose per-step working set fits the VMEM budget."""
    per_row = (4 * W * Cp * abytes              # in + out blocks, double-buffered
               + 3 * W * Cmp * abytes           # 3 h scratch planes
               + 4 * W * (4 * Cmp + Cp))        # f32 temporaries (conv1 y + shifts, acc, conv3)
    fixed = (8 * W * Cp * abytes                # 1-row halos, double-buffered
             + 6 * W * Cmp * abytes             # halo rows of the scratch planes
             + 2 * abytes * (Cp * Cmp + 9 * Cmp * Cmp + Cmp * Cp)   # weights
             + 8 * (2 * Cmp + Cp)               # biases (f32)
             + (4 << 20))                       # Mosaic internal scratch headroom
    th = max(1, min(H, (budget - fixed) // per_row))
    th = int(th)
    while H % th:
        th -= 1
    if B * (H // th) < 2:                       # keep both TensorCores busy (v7x)
        for cand in range(th - 1, 0, -1):
            if H % cand == 0:
                th = cand
                break
    return int(th)


def _rbb_kernel(x_ref, xt_ref, xb_ref, w1_ref, b1_ref, w2_ref, b2_ref,
                w3_ref, b3_ref, o_ref, hc_ref, hm_ref, hp_ref):
    # x_ref : (1, TH, W, Cp)   main row tile (also the residual), compute dtype
    # xt_ref: (1, 1, W, Cp)    image row just above the tile (clamped at border)
    # xb_ref: (1, 1, W, Cp)    image row just below the tile (clamped at border)
    # w1_ref: (Cp, Cmp)        b1_ref: (1, Cmp)  f32
    # w2_ref: (3, 3, Cmp, Cmp) b2_ref: (1, Cmp)  f32   (HWIO, channel-padded)
    # w3_ref: (Cmp, Cp)        b3_ref: (1, Cp)   f32
    # hc/hm/hp_ref: (TH+2, W, Cmp) scratch planes: h, h shifted right (so col w
    #   holds h[w-1]; used by kx=0 taps), h shifted left (h[w+1]; kx=2 taps).
    #   Row r holds image row (tile_start + r - 1); off-image rows are zero.
    i = pl.program_id(1)
    nrt = pl.num_programs(1)
    _, TH, W, Cp = x_ref.shape
    Cmp = w1_ref.shape[1]
    cdt = hc_ref.dtype

    w1 = w1_ref[...]
    b1 = b1_ref[...]
    col = jax.lax.broadcasted_iota(jnp.int32, (1, W, 1), 1)
    not_first_col = col > 0
    not_last_col = col < (W - 1)

    def conv1_store(v, row0, nrows):
        # relu(conv1(v)) -> scratch planes (center / shifted-right / shifted-left).
        y = jnp.dot(v.reshape(nrows * W, Cp), w1,
                    preferred_element_type=jnp.float32) + b1
        y = jnp.maximum(y, 0.0).reshape(nrows, W, Cmp)
        yz = jnp.zeros_like(y)
        y_m = jnp.where(not_first_col, pltpu.roll(y, shift=1, axis=1), yz)
        y_p = jnp.where(not_last_col, pltpu.roll(y, shift=W - 1, axis=1), yz)
        hc_ref[pl.ds(row0, nrows)] = y.astype(cdt)
        hm_ref[pl.ds(row0, nrows)] = y_m.astype(cdt)
        hp_ref[pl.ds(row0, nrows)] = y_p.astype(cdt)

    def zero_store(row0):
        z = jnp.zeros((1, W, Cmp), cdt)
        hc_ref[pl.ds(row0, 1)] = z
        hm_ref[pl.ds(row0, 1)] = z
        hp_ref[pl.ds(row0, 1)] = z

    x = x_ref[0]                                   # (TH, W, Cp)
    conv1_store(x, 1, TH)

    # conv2's padding=1 applies to h = relu(conv1(x)) of the whole image, so
    # halo rows falling outside the image must be zero in h-space (pl.when also
    # skips the wasted MXU work on border tiles).
    @pl.when(i > 0)
    def _():
        conv1_store(xt_ref[0], 0, 1)

    @pl.when(i == 0)
    def _():
        zero_store(0)

    @pl.when(i < nrt - 1)
    def _():
        conv1_store(xb_ref[0], TH + 1, 1)

    @pl.when(i == nrt - 1)
    def _():
        zero_store(TH + 1)

    # 3x3 conv = 9 accumulated MXU dots; every operand is a free major-dim row
    # slice of a scratch plane (plane chooses kx, row offset chooses ky).
    planes = (hm_ref, hc_ref, hp_ref)              # indexed by kx
    acc = None
    for ky in range(3):
        for kx in range(3):
            slab = planes[kx][pl.ds(ky, TH)]       # (TH, W, Cmp)
            d = jnp.dot(slab.reshape(TH * W, Cmp), w2_ref[ky, kx],
                        preferred_element_type=jnp.float32)
            acc = d if acc is None else acc + d
    h2 = jnp.maximum(acc + b2_ref[...], 0.0).astype(cdt)   # (TH*W, Cmp)

    # conv3 (1x1) + residual.
    out = jnp.dot(h2, w3_ref[...],
                  preferred_element_type=jnp.float32) + b3_ref[...]
    out = out.reshape(TH, W, Cp) + x.astype(jnp.float32)
    o_ref[0] = out.astype(o_ref.dtype)


def pack_params(params, in_ch, compute_dtype):
    """Zero-pad / cast weights once into the kernel's lane-dense layout."""
    w1, b1, w2, b2, w3, b3 = params
    cmid = in_ch // 2
    Cp = _round_up(in_ch, _LANE)
    Cmp = _round_up(cmid, _LANE)
    w1p = jnp.zeros((Cp, Cmp), compute_dtype).at[:in_ch, :cmid].set(
        w1.astype(compute_dtype))
    b1p = jnp.zeros((1, Cmp), jnp.float32).at[0, :cmid].set(b1.reshape(-1))
    w2p = jnp.zeros((3, 3, Cmp, Cmp), compute_dtype).at[:, :, :cmid, :cmid].set(
        w2.astype(compute_dtype))
    b2p = jnp.zeros((1, Cmp), jnp.float32).at[0, :cmid].set(b2.reshape(-1))
    w3p = jnp.zeros((Cmp, Cp), compute_dtype).at[:cmid, :in_ch].set(
        w3.astype(compute_dtype))
    b3p = jnp.zeros((1, Cp), jnp.float32).at[0, :in_ch].set(b3.reshape(-1))
    return (w1p, b1p, w2p, b2p, w3p, b3p)


def residual_bottleneck_block_nhwc(x, packed, *, row_tile=None):
    """Chainable entry point.

    x: (B, H, W, Cp) NHWC with Cp a multiple of 128 (zero-padded channels),
    dtype = the compute dtype used when packing the params (bf16 recommended).
    Returns the same shape / dtype so consecutive blocks need no layout work.
    """
    w1p, b1p, w2p, b2p, w3p, b3p = packed
    B, H, W, Cp = x.shape
    Cmp = w1p.shape[1]
    cdt = x.dtype
    abytes = jnp.dtype(cdt).itemsize
    budget = _vmem_budget_bytes()
    TH = (row_tile if row_tile is not None
          else _choose_row_tile(H, W, Cp, Cmp, abytes, budget, B))
    assert H % TH == 0, "row_tile must divide H"
    nrt = H // TH

    return pl.pallas_call(
        _rbb_kernel,
        out_shape=jax.ShapeDtypeStruct((B, H, W, Cp), cdt),
        grid=(B, nrt),
        in_specs=[
            # main row tile
            pl.BlockSpec((1, TH, W, Cp), lambda b, i: (b, i, 0, 0)),
            # 1-row halos (row-block size 1 => block index == row index),
            # clamped at the image border; content is ignored there.
            pl.BlockSpec((1, 1, W, Cp),
                         lambda b, i: (b, jnp.maximum(i * TH - 1, 0), 0, 0)),
            pl.BlockSpec((1, 1, W, Cp),
                         lambda b, i: (b, jnp.minimum(i * TH + TH, H - 1), 0, 0)),
            # weights / biases (resident)
            pl.BlockSpec((Cp, Cmp), lambda b, i: (0, 0)),
            pl.BlockSpec((1, Cmp), lambda b, i: (0, 0)),
            pl.BlockSpec((3, 3, Cmp, Cmp), lambda b, i: (0, 0, 0, 0)),
            pl.BlockSpec((1, Cmp), lambda b, i: (0, 0)),
            pl.BlockSpec((Cmp, Cp), lambda b, i: (0, 0)),
            pl.BlockSpec((1, Cp), lambda b, i: (0, 0)),
        ],
        out_specs=pl.BlockSpec((1, TH, W, Cp), lambda b, i: (b, i, 0, 0)),
        scratch_shapes=[
            pltpu.VMEM((TH + 2, W, Cmp), cdt),   # h (center)
            pltpu.VMEM((TH + 2, W, Cmp), cdt),   # h shifted right (kx=0 taps)
            pltpu.VMEM((TH + 2, W, Cmp), cdt),   # h shifted left  (kx=2 taps)
        ],
        compiler_params=pltpu.CompilerParams(
            dimension_semantics=("parallel", "parallel"),
            vmem_limit_bytes=int(budget)),
    )(x, x, x, w1p, b1p, w2p, b2p, w3p, b3p)


def residual_bottleneck_block(x_nchw, params, *, compute_dtype=jnp.bfloat16,
                              row_tile=None):
    """PyTorch-layout entry point: x (B, C, H, W) f32 -> (B, C, H, W) f32."""
    B, C, H, W = x_nchw.shape
    Cp = _round_up(C, _LANE)
    packed = pack_params(params, C, compute_dtype)
    # TODO(synk): when chaining blocks (ELiC stacks several back-to-back), keep
    # activations in padded NHWC / compute dtype and call
    # residual_bottleneck_block_nhwc directly; the transpose/pad/slice passes
    # below are only needed once at the network boundary.
    x = jnp.transpose(x_nchw, (0, 2, 3, 1)).astype(compute_dtype)
    x = jnp.pad(x, ((0, 0), (0, 0), (0, 0), (0, Cp - C)))
    out = residual_bottleneck_block_nhwc(x, packed, row_tile=row_tile)
    return jnp.transpose(out[..., :C].astype(jnp.float32), (0, 3, 1, 2))


def init_params(key, in_ch):
    """Deterministic, PyTorch-Conv2d-style uniform init (HWIO for the 3x3)."""
    cmid = in_ch // 2
    k1, k2, k3, k4, k5, k6 = jax.random.split(key, 6)

    def u(k, shape, fan_in):
        bound = 1.0 / jnp.sqrt(fan_in)
        return jax.random.uniform(k, shape, jnp.float32, -bound, bound)

    w1 = u(k1, (in_ch, cmid), in_ch)               # 1x1: (Cin, Cmid)
    b1 = u(k2, (1, cmid), in_ch)
    w2 = u(k3, (3, 3, cmid, cmid), cmid * 9)       # 3x3: HWIO
    b2 = u(k4, (1, cmid), cmid * 9)
    w3 = u(k5, (cmid, in_ch), cmid)                # 1x1: (Cmid, Cin)
    b3 = u(k6, (1, in_ch), cmid)
    return (w1, b1, w2, b2, w3, b3)


def _ref_forward(x_nchw, params):
    """Plain-JAX f32 reference (matches PyTorch semantics) for verification."""
    w1, b1, w2, b2, w3, b3 = params
    x = jnp.transpose(x_nchw, (0, 2, 3, 1))
    dn = ('NHWC', 'HWIO', 'NHWC')
    h = jax.lax.conv_general_dilated(
        x, w1.reshape(1, 1, *w1.shape), (1, 1), 'SAME',
        dimension_numbers=dn) + b1.reshape(1, 1, 1, -1)
    h = jax.nn.relu(h)
    h = jax.lax.conv_general_dilated(
        h, w2, (1, 1), 'SAME', dimension_numbers=dn) + b2.reshape(1, 1, 1, -1)
    h = jax.nn.relu(h)
    h = jax.lax.conv_general_dilated(
        h, w3.reshape(1, 1, *w3.shape), (1, 1), 'SAME',
        dimension_numbers=dn) + b3.reshape(1, 1, 1, -1)
    out = h + x
    return jnp.transpose(out, (0, 3, 1, 2))


if __name__ == "__main__":
    key = jax.random.PRNGKey(0)
    kx_, kp_ = jax.random.split(key)

    B, C, H, W = 2, 4, 16, 16                      # in_ch = 4 -> mid = 2
    x = jax.random.normal(kx_, (B, C, H, W), jnp.float32)
    params = init_params(kp_, C)

    ref = jax.block_until_ready(_ref_forward(x, params))

    # Default bf16 MXU path, two row tiles of 8 rows (exercises halo logic).
    out_bf16 = jax.block_until_ready(
        residual_bottleneck_block(x, params, row_tile=8))
    assert out_bf16.shape == (B, C, H, W)
    err_bf16 = float(jnp.max(jnp.abs(out_bf16 - ref)))
    assert jnp.allclose(out_bf16, ref, atol=5e-2, rtol=5e-2), err_bf16

    # f32 path with the generation-aware default tiling (single tile per image).
    out_f32 = jax.block_until_ready(
        residual_bottleneck_block(x, params, compute_dtype=jnp.float32))
    err_f32 = float(jnp.max(jnp.abs(out_f32 - ref)))
    assert jnp.allclose(out_f32, ref, atol=1e-3, rtol=1e-3), err_f32

    print("KERNEL_OK")
</pallas_src>

<mosaic_0001>
module attributes {stable_mosaic.version = 11 : i64} {
  func.func @_rbb_kernel(%arg0: i32, %arg1: i32, %arg2: memref<1x8x16x128xbf16, #tpu.memory_space<vmem>>, %arg3: memref<1x1x16x128xbf16, #tpu.memory_space<vmem>>, %arg4: memref<1x1x16x128xbf16, #tpu.memory_space<vmem>>, %arg5: memref<128x128xbf16, #tpu.memory_space<vmem>>, %arg6: memref<1x128xf32, #tpu.memory_space<vmem>>, %arg7: memref<3x3x128x128xbf16, #tpu.memory_space<vmem>>, %arg8: memref<1x128xf32, #tpu.memory_space<vmem>>, %arg9: memref<128x128xbf16, #tpu.memory_space<vmem>>, %arg10: memref<1x128xf32, #tpu.memory_space<vmem>>, %arg11: memref<1x8x16x128xbf16, #tpu.memory_space<vmem>>, %arg12: memref<10x16x128xbf16, #tpu.memory_space<vmem>>, %arg13: memref<10x16x128xbf16, #tpu.memory_space<vmem>>, %arg14: memref<10x16x128xbf16, #tpu.memory_space<vmem>>) attributes {dimension_semantics = [#tpu.dimension_semantics<parallel>, #tpu.dimension_semantics<parallel>], iteration_bounds = array<i64: 2, 2>, scalar_prefetch = 0 : i64, scratch_operands = 3 : i64, tpu.core_type = #tpu.core_type<tc>, window_params = [{transform_indices = @transform_0, window_bounds = array<i64: 1, 8, 16, 128>}, {transform_indices = @transform_1, window_bounds = array<i64: 1, 1, 16, 128>}, {transform_indices = @transform_2, window_bounds = array<i64: 1, 1, 16, 128>}, {pipeline_mode = #tpu.pipeline_mode<synchronous>, transform_indices = @transform_3, window_bounds = array<i64: 128, 128>}, {pipeline_mode = #tpu.pipeline_mode<synchronous>, transform_indices = @transform_4, window_bounds = array<i64: 1, 128>}, {pipeline_mode = #tpu.pipeline_mode<synchronous>, transform_indices = @transform_5, window_bounds = array<i64: 3, 3, 128, 128>}, {pipeline_mode = #tpu.pipeline_mode<synchronous>, transform_indices = @transform_6, window_bounds = array<i64: 1, 128>}, {pipeline_mode = #tpu.pipeline_mode<synchronous>, transform_indices = @transform_7, window_bounds = array<i64: 128, 128>}, {pipeline_mode = #tpu.pipeline_mode<synchronous>, transform_indices = @transform_8, window_bounds = array<i64: 1, 128>}, {transform_indices = @transform_9, window_bounds = array<i64: 1, 8, 16, 128>}]} {
    %c0 = arith.constant 0 : index
    %c0_0 = arith.constant 0 : index
    %0 = vector.load %arg5[%c0, %c0_0] : memref<128x128xbf16, #tpu.memory_space<vmem>>, vector<128x128xbf16>
    %c0_1 = arith.constant 0 : index
    %c0_2 = arith.constant 0 : index
    %1 = vector.load %arg6[%c0_1, %c0_2] : memref<1x128xf32, #tpu.memory_space<vmem>>, vector<1x128xf32>
    %2 = tpu.iota {dimensions = array<i32: 1>} : vector<1x16x1xi32>
    %c0_i32 = arith.constant 0 : i32
    %3 = vector.broadcast %c0_i32 : i32 to vector<1x16x1xi32>
    %4 = arith.cmpi sgt, %2, %3 : vector<1x16x1xi32>
    %c15_i32 = arith.constant 15 : i32
    %5 = vector.broadcast %c15_i32 : i32 to vector<1x16x1xi32>
    %6 = arith.cmpi slt, %2, %5 : vector<1x16x1xi32>
    %c0_3 = arith.constant 0 : index
    %c0_4 = arith.constant 0 : index
    %c0_5 = arith.constant 0 : index
    %c0_6 = arith.constant 0 : index
    %7 = vector.load %arg2[%c0_3, %c0_4, %c0_5, %c0_6] : memref<1x8x16x128xbf16, #tpu.memory_space<vmem>>, vector<1x8x16x128xbf16>
    %8 = vector.shape_cast %7 : vector<1x8x16x128xbf16> to vector<8x16x128xbf16>
    %9 = vector.shape_cast %8 : vector<8x16x128xbf16> to vector<128x128xbf16>
    %cst = arith.constant dense<0.000000e+00> : vector<128x128xf32>
    %10 = tpu.matmul %9, %0, %cst {dimension_numbers = #tpu.dot_dimension_numbers<[1], [0], [0], [1], [0, 0, 1, 1], [], []>} : vector<128x128xbf16>, vector<128x128xbf16>, vector<128x128xf32> -> vector<128x128xf32>
    %11 = vector.broadcast %1 : vector<1x128xf32> to vector<128x128xf32>
    %12 = arith.addf %10, %11 : vector<128x128xf32>
    %cst_7 = arith.constant 0.000000e+00 : f32
    %13 = vector.broadcast %cst_7 : f32 to vector<128x128xf32>
    %14 = arith.maximumf %12, %13 : vector<128x128xf32>
    %15 = vector.shape_cast %14 : vector<128x128xf32> to vector<8x16x128xf32>
    %cst_8 = arith.constant 0.000000e+00 : f32
    %16 = vector.broadcast %cst_8 : f32 to vector<8x16x128xf32>
    %c1_i32 = arith.constant 1 : i32
    %17 = tpu.dynamic_rotate %15 by %c1_i32 dim 1 : vector<8x16x128xf32>, i32 -> vector<8x16x128xf32>
    %18 = vector.shape_cast %4 : vector<1x16x1xi1> to vector<1x16x1xi1>
    %19 = vector.broadcast %18 : vector<1x16x1xi1> to vector<8x16x128xi1>
    %20 = arith.select %19, %17, %16 : vector<8x16x128xi1>, vector<8x16x128xf32>
    %c15_i32_9 = arith.constant 15 : i32
    %21 = tpu.dynamic_rotate %15 by %c15_i32_9 dim 1 : vector<8x16x128xf32>, i32 -> vector<8x16x128xf32>
    %22 = vector.shape_cast %6 : vector<1x16x1xi1> to vector<1x16x1xi1>
    %23 = vector.broadcast %22 : vector<1x16x1xi1> to vector<8x16x128xi1>
    %24 = arith.select %23, %21, %16 : vector<8x16x128xi1>, vector<8x16x128xf32>
    %25 = arith.truncf %15 : vector<8x16x128xf32> to vector<8x16x128xbf16>
    %c1 = arith.constant 1 : index
    %c0_10 = arith.constant 0 : index
    %c0_11 = arith.constant 0 : index
    %26 = vector.load %arg12[%c1, %c0_10, %c0_11] : memref<10x16x128xbf16, #tpu.memory_space<vmem>>, vector<8x16x128xbf16>
    tpu.vector_store %arg12[%c1, %c0_10, %c0_11], %25 {strides = array<i32>} : memref<10x16x128xbf16, #tpu.memory_space<vmem>>, vector<8x16x128xbf16>,
    %27 = arith.truncf %20 : vector<8x16x128xf32> to vector<8x16x128xbf16>
    %c1_12 = arith.constant 1 : index
    %c0_13 = arith.constant 0 : index
    %c0_14 = arith.constant 0 : index
    %28 = vector.load %arg13[%c1_12, %c0_13, %c0_14] : memref<10x16x128xbf16, #tpu.memory_space<vmem>>, vector<8x16x128xbf16>
    tpu.vector_store %arg13[%c1_12, %c0_13, %c0_14], %27 {strides = array<i32>} : memref<10x16x128xbf16, #tpu.memory_space<vmem>>, vector<8x16x128xbf16>,
    %29 = arith.truncf %24 : vector<8x16x128xf32> to vector<8x16x128xbf16>
    %c1_15 = arith.constant 1 : index
    %c0_16 = arith.constant 0 : index
    %c0_17 = arith.constant 0 : index
    %30 = vector.load %arg14[%c1_15, %c0_16, %c0_17] : memref<10x16x128xbf16, #tpu.memory_space<vmem>>, vector<8x16x128xbf16>
    tpu.vector_store %arg14[%c1_15, %c0_16, %c0_17], %29 {strides = array<i32>} : memref<10x16x128xbf16, #tpu.memory_space<vmem>>, vector<8x16x128xbf16>,
    %c0_i32_18 = arith.constant 0 : i32
    %31 = arith.cmpi sgt, %arg1, %c0_i32_18 : i32
    %32 = arith.extui %31 : i1 to i32
    %c0_i32_19 = arith.constant 0 : i32
    %33 = arith.cmpi ne, %32, %c0_i32_19 : i32
    scf.if %33 {
      %c0_109 = arith.constant 0 : index
      %c0_110 = arith.constant 0 : index
      %c0_111 = arith.constant 0 : index
      %c0_112 = arith.constant 0 : index
      %114 = vector.load %arg3[%c0_109, %c0_110, %c0_111, %c0_112] : memref<1x1x16x128xbf16, #tpu.memory_space<vmem>>, vector<1x1x16x128xbf16>
      %115 = vector.shape_cast %114 : vector<1x1x16x128xbf16> to vector<1x16x128xbf16>
      %116 = vector.shape_cast %115 : vector<1x16x128xbf16> to vector<16x128xbf16>
      %cst_113 = arith.constant dense<0.000000e+00> : vector<16x128xf32>
      %117 = tpu.matmul %116, %0, %cst_113 {dimension_numbers = #tpu.dot_dimension_numbers<[1], [0], [0], [1], [0, 0, 1, 1], [], []>} : vector<16x128xbf16>, vector<128x128xbf16>, vector<16x128xf32> -> vector<16x128xf32>
      %118 = vector.broadcast %1 : vector<1x128xf32> to vector<16x128xf32>
      %119 = arith.addf %117, %118 : vector<16x128xf32>
      %cst_114 = arith.constant 0.000000e+00 : f32
      %120 = vector.broadcast %cst_114 : f32 to vector<16x128xf32>
      %121 = arith.maximumf %119, %120 : vector<16x128xf32>
      %122 = vector.shape_cast %121 : vector<16x128xf32> to vector<1x16x128xf32>
      %cst_115 = arith.constant 0.000000e+00 : f32
      %123 = vector.broadcast %cst_115 : f32 to vector<1x16x128xf32>
      %c1_i32_116 = arith.constant 1 : i32
      %124 = tpu.dynamic_rotate %122 by %c1_i32_116 dim 1 : vector<1x16x128xf32>, i32 -> vector<1x16x128xf32>
      %125 = vector.shape_cast %4 : vector<1x16x1xi1> to vector<1x16x1xi1>
      %126 = vector.broadcast %125 : vector<1x16x1xi1> to vector<1x16x128xi1>
      %127 = arith.select %126, %124, %123 : vector<1x16x128xi1>, vector<1x16x128xf32>
      %c15_i32_117 = arith.constant 15 : i32
      %128 = tpu.dynamic_rotate %122 by %c15_i32_117 dim 1 : vector<1x16x128xf32>, i32 -> vector<1x16x128xf32>
      %129 = vector.shape_cast %6 : vector<1x16x1xi1> to vector<1x16x1xi1>
      %130 = vector.broadcast %129 : vector<1x16x1xi1> to vector<1x16x128xi1>
      %131 = arith.select %130, %128, %123 : vector<1x16x128xi1>, vector<1x16x128xf32>
      %132 = arith.truncf %122 : vector<1x16x128xf32> to vector<1x16x128xbf16>
      %c0_118 = arith.constant 0 : index
      %c0_119 = arith.constant 0 : index
      %c0_120 = arith.constant 0 : index
      %133 = vector.load %arg12[%c0_118, %c0_119, %c0_120] : memref<10x16x128xbf16, #tpu.memory_space<vmem>>, vector<1x16x128xbf16>
      tpu.vector_store %arg12[%c0_118, %c0_119, %c0_120], %132 {strides = array<i32>} : memref<10x16x128xbf16, #tpu.memory_space<vmem>>, vector<1x16x128xbf16>,
      %134 = arith.truncf %127 : vector<1x16x128xf32> to vector<1x16x128xbf16>
      %c0_121 = arith.constant 0 : index
      %c0_122 = arith.constant 0 : index
      %c0_123 = arith.constant 0 : index
      %135 = vector.load %arg13[%c0_121, %c0_122, %c0_123] : memref<10x16x128xbf16, #tpu.memory_space<vmem>>, vector<1x16x128xbf16>
      tpu.vector_store %arg13[%c0_121, %c0_122, %c0_123], %134 {strides = array<i32>} : memref<10x16x128xbf16, #tpu.memory_space<vmem>>, vector<1x16x128xbf16>,
      %136 = arith.truncf %131 : vector<1x16x128xf32> to vector<1x16x128xbf16>
      %c0_124 = arith.constant 0 : index
      %c0_125 = arith.constant 0 : index
      %c0_126 = arith.constant 0 : index
      %137 = vector.load %arg14[%c0_124, %c0_125, %c0_126] : memref<10x16x128xbf16, #tpu.memory_space<vmem>>, vector<1x16x128xbf16>
      tpu.vector_store %arg14[%c0_124, %c0_125, %c0_126], %136 {strides = array<i32>} : memref<10x16x128xbf16, #tpu.memory_space<vmem>>, vector<1x16x128xbf16>,
    } else {
    }
    %c0_i32_20 = arith.constant 0 : i32
    %34 = arith.cmpi eq, %arg1, %c0_i32_20 : i32
    %35 = arith.extui %34 : i1 to i32
    %c0_i32_21 = arith.constant 0 : i32
    %36 = arith.cmpi ne, %35, %c0_i32_21 : i32
    scf.if %36 {
      %cst_109 = arith.constant 0.000000e+00 : bf16
      %114 = vector.broadcast %cst_109 : bf16 to vector<1x16x128xbf16>
      %c0_110 = arith.constant 0 : index
      %c0_111 = arith.constant 0 : index
      %c0_112 = arith.constant 0 : index
      %115 = vector.load %arg12[%c0_110, %c0_111, %c0_112] : memref<10x16x128xbf16, #tpu.memory_space<vmem>>, vector<1x16x128xbf16>
      tpu.vector_store %arg12[%c0_110, %c0_111, %c0_112], %114 {strides = array<i32>} : memref<10x16x128xbf16, #tpu.memory_space<vmem>>, vector<1x16x128xbf16>,
      %c0_113 = arith.constant 0 : index
      %c0_114 = arith.constant 0 : index
      %c0_115 = arith.constant 0 : index
      %116 = vector.load %arg13[%c0_113, %c0_114, %c0_115] : memref<10x16x128xbf16, #tpu.memory_space<vmem>>, vector<1x16x128xbf16>
      tpu.vector_store %arg13[%c0_113, %c0_114, %c0_115], %114 {strides = array<i32>} : memref<10x16x128xbf16, #tpu.memory_space<vmem>>, vector<1x16x128xbf16>,
      %c0_116 = arith.constant 0 : index
      %c0_117 = arith.constant 0 : index
      %c0_118 = arith.constant 0 : index
      %117 = vector.load %arg14[%c0_116, %c0_117, %c0_118] : memref<10x16x128xbf16, #tpu.memory_space<vmem>>, vector<1x16x128xbf16>
      tpu.vector_store %arg14[%c0_116, %c0_117, %c0_118], %114 {strides = array<i32>} : memref<10x16x128xbf16, #tpu.memory_space<vmem>>, vector<1x16x128xbf16>,
    } else {
    }
    %c1_i32_22 = arith.constant 1 : i32
    %37 = arith.cmpi slt, %arg1, %c1_i32_22 : i32
    %38 = arith.extui %37 : i1 to i32
    %c0_i32_23 = arith.constant 0 : i32
    %39 = arith.cmpi ne, %38, %c0_i32_23 : i32
    scf.if %39 {
      %c0_109 = arith.constant 0 : index
      %c0_110 = arith.constant 0 : index
      %c0_111 = arith.constant 0 : index
      %c0_112 = arith.constant 0 : index
      %114 = vector.load %arg4[%c0_109, %c0_110, %c0_111, %c0_112] : memref<1x1x16x128xbf16, #tpu.memory_space<vmem>>, vector<1x1x16x128xbf16>
      %115 = vector.shape_cast %114 : vector<1x1x16x128xbf16> to vector<1x16x128xbf16>
      %116 = vector.shape_cast %115 : vector<1x16x128xbf16> to vector<16x128xbf16>
      %cst_113 = arith.constant dense<0.000000e+00> : vector<16x128xf32>
      %117 = tpu.matmul %116, %0, %cst_113 {dimension_numbers = #tpu.dot_dimension_numbers<[1], [0], [0], [1], [0, 0, 1, 1], [], []>} : vector<16x128xbf16>, vector<128x128xbf16>, vector<16x128xf32> -> vector<16x128xf32>
      %118 = vector.broadcast %1 : vector<1x128xf32> to vector<16x128xf32>
      %119 = arith.addf %117, %118 : vector<16x128xf32>
      %cst_114 = arith.constant 0.000000e+00 : f32
      %120 = vector.broadcast %cst_114 : f32 to vector<16x128xf32>
      %121 = arith.maximumf %119, %120 : vector<16x128xf32>
      %122 = vector.shape_cast %121 : vector<16x128xf32> to vector<1x16x128xf32>
      %cst_115 = arith.constant 0.000000e+00 : f32
      %123 = vector.broadcast %cst_115 : f32 to vector<1x16x128xf32>
      %c1_i32_116 = arith.constant 1 : i32
      %124 = tpu.dynamic_rotate %122 by %c1_i32_116 dim 1 : vector<1x16x128xf32>, i32 -> vector<1x16x128xf32>
      %125 = vector.shape_cast %4 : vector<1x16x1xi1> to vector<1x16x1xi1>
      %126 = vector.broadcast %125 : vector<1x16x1xi1> to vector<1x16x128xi1>
      %127 = arith.select %126, %124, %123 : vector<1x16x128xi1>, vector<1x16x128xf32>
      %c15_i32_117 = arith.constant 15 : i32
      %128 = tpu.dynamic_rotate %122 by %c15_i32_117 dim 1 : vector<1x16x128xf32>, i32 -> vector<1x16x128xf32>
      %129 = vector.shape_cast %6 : vector<1x16x1xi1> to vector<1x16x1xi1>
      %130 = vector.broadcast %129 : vector<1x16x1xi1> to vector<1x16x128xi1>
      %131 = arith.select %130, %128, %123 : vector<1x16x128xi1>, vector<1x16x128xf32>
      %132 = arith.truncf %122 : vector<1x16x128xf32> to vector<1x16x128xbf16>
      %c9 = arith.constant 9 : index
      %c0_118 = arith.constant 0 : index
      %c0_119 = arith.constant 0 : index
      %133 = vector.load %arg12[%c9, %c0_118, %c0_119] : memref<10x16x128xbf16, #tpu.memory_space<vmem>>, vector<1x16x128xbf16>
      tpu.vector_store %arg12[%c9, %c0_118, %c0_119], %132 {strides = array<i32>} : memref<10x16x128xbf16, #tpu.memory_space<vmem>>, vector<1x16x128xbf16>,
      %134 = arith.truncf %127 : vector<1x16x128xf32> to vector<1x16x128xbf16>
      %c9_120 = arith.constant 9 : index
      %c0_121 = arith.constant 0 : index
      %c0_122 = arith.constant 0 : index
      %135 = vector.load %arg13[%c9_120, %c0_121, %c0_122] : memref<10x16x128xbf16, #tpu.memory_space<vmem>>, vector<1x16x128xbf16>
      tpu.vector_store %arg13[%c9_120, %c0_121, %c0_122], %134 {strides = array<i32>} : memref<10x16x128xbf16, #tpu.memory_space<vmem>>, vector<1x16x128xbf16>,
      %136 = arith.truncf %131 : vector<1x16x128xf32> to vector<1x16x128xbf16>
      %c9_123 = arith.constant 9 : index
      %c0_124 = arith.constant 0 : index
      %c0_125 = arith.constant 0 : index
      %137 = vector.load %arg14[%c9_123, %c0_124, %c0_125] : memref<10x16x128xbf16, #tpu.memory_space<vmem>>, vector<1x16x128xbf16>
      tpu.vector_store %arg14[%c9_123, %c0_124, %c0_125], %136 {strides = array<i32>} : memref<10x16x128xbf16, #tpu.memory_space<vmem>>, vector<1x16x128xbf16>,
    } else {
    }
    %c1_i32_24 = arith.constant 1 : i32
    %40 = arith.cmpi eq, %arg1, %c1_i32_24 : i32
    %41 = arith.extui %40 : i1 to i32
    %c0_i32_25 = arith.constant 0 : i32
    %42 = arith.cmpi ne, %41, %c0_i32_25 : i32
    scf.if %42 {
      %cst_109 = arith.constant 0.000000e+00 : bf16
      %114 = vector.broadcast %cst_109 : bf16 to vector<1x16x128xbf16>
      %c9 = arith.constant 9 : index
      %c0_110 = arith.constant 0 : index
      %c0_111 = arith.constant 0 : index
      %115 = vector.load %arg12[%c9, %c0_110, %c0_111] : memref<10x16x128xbf16, #tpu.memory_space<vmem>>, vector<1x16x128xbf16>
      tpu.vector_store %arg12[%c9, %c0_110, %c0_111], %114 {strides = array<i32>} : memref<10x16x128xbf16, #tpu.memory_space<vmem>>, vector<1x16x128xbf16>,
      %c9_112 = arith.constant 9 : index
      %c0_113 = arith.constant 0 : index
      %c0_114 = arith.constant 0 : index
      %116 = vector.load %arg13[%c9_112, %c0_113, %c0_114] : memref<10x16x128xbf16, #tpu.memory_space<vmem>>, vector<1x16x128xbf16>
      tpu.vector_store %arg13[%c9_112, %c0_113, %c0_114], %114 {strides = array<i32>} : memref<10x16x128xbf16, #tpu.memory_space<vmem>>, vector<1x16x128xbf16>,
      %c9_115 = arith.constant 9 : index
      %c0_116 = arith.constant 0 : index
      %c0_117 = arith.constant 0 : index
      %117 = vector.load %arg14[%c9_115, %c0_116, %c0_117] : memref<10x16x128xbf16, #tpu.memory_space<vmem>>, vector<1x16x128xbf16>
      tpu.vector_store %arg14[%c9_115, %c0_116, %c0_117], %114 {strides = array<i32>} : memref<10x16x128xbf16, #tpu.memory_space<vmem>>, vector<1x16x128xbf16>,
    } else {
    }
    %c0_26 = arith.constant 0 : index
    %c0_27 = arith.constant 0 : index
    %c0_28 = arith.constant 0 : index
    %43 = vector.load %arg13[%c0_26, %c0_27, %c0_28] : memref<10x16x128xbf16, #tpu.memory_space<vmem>>, vector<8x16x128xbf16>
    %44 = vector.shape_cast %43 : vector<8x16x128xbf16> to vector<128x128xbf16>
    %c0_29 = arith.constant 0 : index
    %c0_30 = arith.constant 0 : index
    %c0_31 = arith.constant 0 : index
    %c0_32 = arith.constant 0 : index
    %45 = vector.load %arg7[%c0_29, %c0_30, %c0_31, %c0_32] : memref<3x3x128x128xbf16, #tpu.memory_space<vmem>>, vector<1x1x128x128xbf16>
    %46 = vector.shape_cast %45 : vector<1x1x128x128xbf16> to vector<128x128xbf16>
    %cst_33 = arith.constant dense<0.000000e+00> : vector<128x128xf32>
    %47 = tpu.matmul %44, %46, %cst_33 {dimension_numbers = #tpu.dot_dimension_numbers<[1], [0], [0], [1], [0, 0, 1, 1], [], []>} : vector<128x128xbf16>, vector<128x128xbf16>, vector<128x128xf32> -> vector<128x128xf32>
    %c0_34 = arith.constant 0 : index
    %c0_35 = arith.constant 0 : index
    %c0_36 = arith.constant 0 : index
    %48 = vector.load %arg12[%c0_34, %c0_35, %c0_36] : memref<10x16x128xbf16, #tpu.memory_space<vmem>>, vector<8x16x128xbf16>
    %49 = vector.shape_cast %48 : vector<8x16x128xbf16> to vector<128x128xbf16>
    %c0_37 = arith.constant 0 : index
    %c1_38 = arith.constant 1 : index
    %c0_39 = arith.constant 0 : index
    %c0_40 = arith.constant 0 : index
    %50 = vector.load %arg7[%c0_37, %c1_38, %c0_39, %c0_40] : memref<3x3x128x128xbf16, #tpu.memory_space<vmem>>, vector<1x1x128x128xbf16>
    %51 = vector.shape_cast %50 : vector<1x1x128x128xbf16> to vector<128x128xbf16>
    %cst_41 = arith.constant dense<0.000000e+00> : vector<128x128xf32>
    %52 = tpu.matmul %49, %51, %cst_41 {dimension_numbers = #tpu.dot_dimension_numbers<[1], [0], [0], [1], [0, 0, 1, 1], [], []>} : vector<128x128xbf16>, vector<128x128xbf16>, vector<128x128xf32> -> vector<128x128xf32>
    %53 = arith.addf %47, %52 : vector<128x128xf32>
    %c0_42 = arith.constant 0 : index
    %c0_43 = arith.constant 0 : index
    %c0_44 = arith.constant 0 : index
    %54 = vector.load %arg14[%c0_42, %c0_43, %c0_44] : memref<10x16x128xbf16, #tpu.memory_space<vmem>>, vector<8x16x128xbf16>
    %55 = vector.shape_cast %54 : vector<8x16x128xbf16> to vector<128x128xbf16>
    %c0_45 = arith.constant 0 : index
    %c2 = arith.constant 2 : index
    %c0_46 = arith.constant 0 : index
    %c0_47 = arith.constant 0 : index
    %56 = vector.load %arg7[%c0_45, %c2, %c0_46, %c0_47] : memref<3x3x128x128xbf16, #tpu.memory_space<vmem>>, vector<1x1x128x128xbf16>
    %57 = vector.shape_cast %56 : vector<1x1x128x128xbf16> to vector<128x128xbf16>
    %cst_48 = arith.constant dense<0.000000e+00> : vector<128x128xf32>
    %58 = tpu.matmul %55, %57, %cst_48 {dimension_numbers = #tpu.dot_dimension_numbers<[1], [0], [0], [1], [0, 0, 1, 1], [], []>} : vector<128x128xbf16>, vector<128x128xbf16>, vector<128x128xf32> -> vector<128x128xf32>
    %59 = arith.addf %53, %58 : vector<128x128xf32>
    %c1_49 = arith.constant 1 : index
    %c0_50 = arith.constant 0 : index
    %c0_51 = arith.constant 0 : index
    %60 = vector.load %arg13[%c1_49, %c0_50, %c0_51] : memref<10x16x128xbf16, #tpu.memory_space<vmem>>, vector<8x16x128xbf16>
    %61 = vector.shape_cast %60 : vector<8x16x128xbf16> to vector<128x128xbf16>
    %c1_52 = arith.constant 1 : index
    %c0_53 = arith.constant 0 : index
    %c0_54 = arith.constant 0 : index
    %c0_55 = arith.constant 0 : index
    %62 = vector.load %arg7[%c1_52, %c0_53, %c0_54, %c0_55] : memref<3x3x128x128xbf16, #tpu.memory_space<vmem>>, vector<1x1x128x128xbf16>
    %63 = vector.shape_cast %62 : vector<1x1x128x128xbf16> to vector<128x128xbf16>
    %cst_56 = arith.constant dense<0.000000e+00> : vector<128x128xf32>
    %64 = tpu.matmul %61, %63, %cst_56 {dimension_numbers = #tpu.dot_dimension_numbers<[1], [0], [0], [1], [0, 0, 1, 1], [], []>} : vector<128x128xbf16>, vector<128x128xbf16>, vector<128x128xf32> -> vector<128x128xf32>
    %65 = arith.addf %59, %64 : vector<128x128xf32>
    %c1_57 = arith.constant 1 : index
    %c0_58 = arith.constant 0 : index
    %c0_59 = arith.constant 0 : index
    %66 = vector.load %arg12[%c1_57, %c0_58, %c0_59] : memref<10x16x128xbf16, #tpu.memory_space<vmem>>, vector<8x16x128xbf16>
    %67 = vector.shape_cast %66 : vector<8x16x128xbf16> to vector<128x128xbf16>
    %c1_60 = arith.constant 1 : index
    %c1_61 = arith.constant 1 : index
    %c0_62 = arith.constant 0 : index
    %c0_63 = arith.constant 0 : index
    %68 = vector.load %arg7[%c1_60, %c1_61, %c0_62, %c0_63] : memref<3x3x128x128xbf16, #tpu.memory_space<vmem>>, vector<1x1x128x128xbf16>
    %69 = vector.shape_cast %68 : vector<1x1x128x128xbf16> to vector<128x128xbf16>
    %cst_64 = arith.constant dense<0.000000e+00> : vector<128x128xf32>
    %70 = tpu.matmul %67, %69, %cst_64 {dimension_numbers = #tpu.dot_dimension_numbers<[1], [0], [0], [1], [0, 0, 1, 1], [], []>} : vector<128x128xbf16>, vector<128x128xbf16>, vector<128x128xf32> -> vector<128x128xf32>
    %71 = arith.addf %65, %70 : vector<128x128xf32>
    %c1_65 = arith.constant 1 : index
    %c0_66 = arith.constant 0 : index
    %c0_67 = arith.constant 0 : index
    %72 = vector.load %arg14[%c1_65, %c0_66, %c0_67] : memref<10x16x128xbf16, #tpu.memory_space<vmem>>, vector<8x16x128xbf16>
    %73 = vector.shape_cast %72 : vector<8x16x128xbf16> to vector<128x128xbf16>
    %c1_68 = arith.constant 1 : index
    %c2_69 = arith.constant 2 : index
    %c0_70 = arith.constant 0 : index
    %c0_71 = arith.constant 0 : index
    %74 = vector.load %arg7[%c1_68, %c2_69, %c0_70, %c0_71] : memref<3x3x128x128xbf16, #tpu.memory_space<vmem>>, vector<1x1x128x128xbf16>
    %75 = vector.shape_cast %74 : vector<1x1x128x128xbf16> to vector<128x128xbf16>
    %cst_72 = arith.constant dense<0.000000e+00> : vector<128x128xf32>
    %76 = tpu.matmul %73, %75, %cst_72 {dimension_numbers = #tpu.dot_dimension_numbers<[1], [0], [0], [1], [0, 0, 1, 1], [], []>} : vector<128x128xbf16>, vector<128x128xbf16>, vector<128x128xf32> -> vector<128x128xf32>
    %77 = arith.addf %71, %76 : vector<128x128xf32>
    %c2_73 = arith.constant 2 : index
    %c0_74 = arith.constant 0 : index
    %c0_75 = arith.constant 0 : index
    %78 = vector.load %arg13[%c2_73, %c0_74, %c0_75] : memref<10x16x128xbf16, #tpu.memory_space<vmem>>, vector<8x16x128xbf16>
    %79 = vector.shape_cast %78 : vector<8x16x128xbf16> to vector<128x128xbf16>
    %c2_76 = arith.constant 2 : index
    %c0_77 = arith.constant 0 : index
    %c0_78 = arith.constant 0 : index
    %c0_79 = arith.constant 0 : index
    %80 = vector.load %arg7[%c2_76, %c0_77, %c0_78, %c0_79] : memref<3x3x128x128xbf16, #tpu.memory_space<vmem>>, vector<1x1x128x128xbf16>
    %81 = vector.shape_cast %80 : vector<1x1x128x128xbf16> to vector<128x128xbf16>
    %cst_80 = arith.constant dense<0.000000e+00> : vector<128x128xf32>
    %82 = tpu.matmul %79, %81, %cst_80 {dimension_numbers = #tpu.dot_dimension_numbers<[1], [0], [0], [1], [0, 0, 1, 1], [], []>} : vector<128x128xbf16>, vector<128x128xbf16>, vector<128x128xf32> -> vector<128x128xf32>
    %83 = arith.addf %77, %82 : vector<128x128xf32>
    %c2_81 = arith.constant 2 : index
    %c0_82 = arith.constant 0 : index
    %c0_83 = arith.constant 0 : index
    %84 = vector.load %arg12[%c2_81, %c0_82, %c0_83] : memref<10x16x128xbf16, #tpu.memory_space<vmem>>, vector<8x16x128xbf16>
    %85 = vector.shape_cast %84 : vector<8x16x128xbf16> to vector<128x128xbf16>
    %c2_84 = arith.constant 2 : index
    %c1_85 = arith.constant 1 : index
    %c0_86 = arith.constant 0 : index
    %c0_87 = arith.constant 0 : index
    %86 = vector.load %arg7[%c2_84, %c1_85, %c0_86, %c0_87] : memref<3x3x128x128xbf16, #tpu.memory_space<vmem>>, vector<1x1x128x128xbf16>
    %87 = vector.shape_cast %86 : vector<1x1x128x128xbf16> to vector<128x128xbf16>
    %cst_88 = arith.constant dense<0.000000e+00> : vector<128x128xf32>
    %88 = tpu.matmul %85, %87, %cst_88 {dimension_numbers = #tpu.dot_dimension_numbers<[1], [0], [0], [1], [0, 0, 1, 1], [], []>} : vector<128x128xbf16>, vector<128x128xbf16>, vector<128x128xf32> -> vector<128x128xf32>
    %89 = arith.addf %83, %88 : vector<128x128xf32>
    %c2_89 = arith.constant 2 : index
    %c0_90 = arith.constant 0 : index
    %c0_91 = arith.constant 0 : index
    %90 = vector.load %arg14[%c2_89, %c0_90, %c0_91] : memref<10x16x128xbf16, #tpu.memory_space<vmem>>, vector<8x16x128xbf16>
    %91 = vector.shape_cast %90 : vector<8x16x128xbf16> to vector<128x128xbf16>
    %c2_92 = arith.constant 2 : index
    %c2_93 = arith.constant 2 : index
    %c0_94 = arith.constant 0 : index
    %c0_95 = arith.constant 0 : index
    %92 = vector.load %arg7[%c2_92, %c2_93, %c0_94, %c0_95] : memref<3x3x128x128xbf16, #tpu.memory_space<vmem>>, vector<1x1x128x128xbf16>
    %93 = vector.shape_cast %92 : vector<1x1x128x128xbf16> to vector<128x128xbf16>
    %cst_96 = arith.constant dense<0.000000e+00> : vector<128x128xf32>
    %94 = tpu.matmul %91, %93, %cst_96 {dimension_numbers = #tpu.dot_dimension_numbers<[1], [0], [0], [1], [0, 0, 1, 1], [], []>} : vector<128x128xbf16>, vector<128x128xbf16>, vector<128x128xf32> -> vector<128x128xf32>
    %95 = arith.addf %89, %94 : vector<128x128xf32>
    %c0_97 = arith.constant 0 : index
    %c0_98 = arith.constant 0 : index
    %96 = vector.load %arg8[%c0_97, %c0_98] : memref<1x128xf32, #tpu.memory_space<vmem>>, vector<1x128xf32>
    %97 = vector.broadcast %96 : vector<1x128xf32> to vector<128x128xf32>
    %98 = arith.addf %95, %97 : vector<128x128xf32>
    %cst_99 = arith.constant 0.000000e+00 : f32
    %99 = vector.broadcast %cst_99 : f32 to vector<128x128xf32>
    %100 = arith.maximumf %98, %99 : vector<128x128xf32>
    %101 = arith.truncf %100 : vector<128x128xf32> to vector<128x128xbf16>
    %c0_100 = arith.constant 0 : index
    %c0_101 = arith.constant 0 : index
    %102 = vector.load %arg9[%c0_100, %c0_101] : memref<128x128xbf16, #tpu.memory_space<vmem>>, vector<128x128xbf16>
    %cst_102 = arith.constant dense<0.000000e+00> : vector<128x128xf32>
    %103 = tpu.matmul %101, %102, %cst_102 {dimension_numbers = #tpu.dot_dimension_numbers<[1], [0], [0], [1], [0, 0, 1, 1], [], []>} : vector<128x128xbf16>, vector<128x128xbf16>, vector<128x128xf32> -> vector<128x128xf32>
    %c0_103 = arith.constant 0 : index
    %c0_104 = arith.constant 0 : index
    %104 = vector.load %arg10[%c0_103, %c0_104] : memref<1x128xf32, #tpu.memory_space<vmem>>, vector<1x128xf32>
    %105 = vector.broadcast %104 : vector<1x128xf32> to vector<128x128xf32>
    %106 = arith.addf %103, %105 : vector<128x128xf32>
    %107 = vector.shape_cast %106 : vector<128x128xf32> to vector<8x16x128xf32>
    %108 = arith.extf %8 : vector<8x16x128xbf16> to vector<8x16x128xf32>
    %109 = arith.addf %107, %108 : vector<8x16x128xf32>
    %110 = arith.truncf %109 : vector<8x16x128xf32> to vector<8x16x128xbf16>
    %c0_105 = arith.constant 0 : index
    %c0_106 = arith.constant 0 : index
    %c0_107 = arith.constant 0 : index
    %c0_108 = arith.constant 0 : index
    %111 = vector.load %arg11[%c0_105, %c0_106, %c0_107, %c0_108] : memref<1x8x16x128xbf16, #tpu.memory_space<vmem>>, vector<1x8x16x128xbf16>
    %112 = vector.shape_cast %111 : vector<1x8x16x128xbf16> to vector<8x16x128xbf16>
    %113 = vector.shape_cast %110 : vector<8x16x128xbf16> to vector<1x8x16x128xbf16>
    tpu.vector_store %arg11[%c0_105, %c0_106, %c0_107, %c0_108], %113 {strides = array<i32>} : memref<1x8x16x128xbf16, #tpu.memory_space<vmem>>, vector<1x8x16x128xbf16>,
    return
  }
  func.func @transform_0(%arg0: i32, %arg1: i32) -> (i32, i32, i32, i32) {
    %c0_i32 = arith.constant 0 : i32
    %c0_i32_0 = arith.constant 0 : i32
    %c0_i32_1 = arith.constant 0 : i32
    return %arg0, %arg1, %c0_i32, %c0_i32_0 : i32, i32, i32, i32
  }
  func.func @transform_1(%arg0: i32, %arg1: i32) -> (i32, i32, i32, i32) {
    %c8_i32 = arith.constant 8 : i32
    %0 = arith.muli %arg1, %c8_i32 : i32
    %c1_i32 = arith.constant 1 : i32
    %1 = arith.subi %0, %c1_i32 : i32
    %c0_i32 = arith.constant 0 : i32
    %2 = arith.maxsi %1, %c0_i32 : i32
    %c0_i32_0 = arith.constant 0 : i32
    %c0_i32_1 = arith.constant 0 : i32
    %c0_i32_2 = arith.constant 0 : i32
    return %arg0, %2, %c0_i32_0, %c0_i32_1 : i32, i32, i32, i32
  }
  func.func @transform_2(%arg0: i32, %arg1: i32) -> (i32, i32, i32, i32) {
    %c8_i32 = arith.constant 8 : i32
    %0 = arith.muli %arg1, %c8_i32 : i32
    %c8_i32_0 = arith.constant 8 : i32
    %1 = arith.addi %0, %c8_i32_0 : i32
    %c15_i32 = arith.constant 15 : i32
    %2 = arith.minsi %1, %c15_i32 : i32
    %c0_i32 = arith.constant 0 : i32
    %c0_i32_1 = arith.constant 0 : i32
    %c0_i32_2 = arith.constant 0 : i32
    return %arg0, %2, %c0_i32, %c0_i32_1 : i32, i32, i32, i32
  }
  func.func @transform_3(%arg0: i32, %arg1: i32) -> (i32, i32) {
    %c0_i32 = arith.constant 0 : i32
    %c0_i32_0 = arith.constant 0 : i32
    %c0_i32_1 = arith.constant 0 : i32
    return %c0_i32, %c0_i32_0 : i32, i32
  }
  func.func @transform_4(%arg0: i32, %arg1: i32) -> (i32, i32) {
    %c0_i32 = arith.constant 0 : i32
    %c0_i32_0 = arith.constant 0 : i32
    %c0_i32_1 = arith.constant 0 : i32
    return %c0_i32, %c0_i32_0 : i32, i32
  }
  func.func @transform_5(%arg0: i32, %arg1: i32) -> (i32, i32, i32, i32) {
    %c0_i32 = arith.constant 0 : i32
    %c0_i32_0 = arith.constant 0 : i32
    %c0_i32_1 = arith.constant 0 : i32
    %c0_i32_2 = arith.constant 0 : i32
    %c0_i32_3 = arith.constant 0 : i32
    return %c0_i32, %c0_i32_0, %c0_i32_1, %c0_i32_2 : i32, i32, i32, i32
  }
  func.func @transform_6(%arg0: i32, %arg1: i32) -> (i32, i32) {
    %c0_i32 = arith.constant 0 : i32
    %c0_i32_0 = arith.constant 0 : i32
    %c0_i32_1 = arith.constant 0 : i32
    return %c0_i32, %c0_i32_0 : i32, i32
  }
  func.func @transform_7(%arg0: i32, %arg1: i32) -> (i32, i32) {
    %c0_i32 = arith.constant 0 : i32
    %c0_i32_0 = arith.constant 0 : i32
    %c0_i32_1 = arith.constant 0 : i32
    return %c0_i32, %c0_i32_0 : i32, i32
  }
  func.func @transform_8(%arg0: i32, %arg1: i32) -> (i32, i32) {
    %c0_i32 = arith.constant 0 : i32
    %c0_i32_0 = arith.constant 0 : i32
    %c0_i32_1 = arith.constant 0 : i32
    return %c0_i32, %c0_i32_0 : i32, i32
  }
  func.func @transform_9(%arg0: i32, %arg1: i32) -> (i32, i32, i32, i32) {
    %c0_i32 = arith.constant 0 : i32
    %c0_i32_0 = arith.constant 0 : i32
    %c0_i32_1 = arith.constant 0 : i32
    return %arg0, %arg1, %c0_i32, %c0_i32_0 : i32, i32, i32, i32
  }
}

</mosaic_0001>

<bundles_post_ra>
// kernel: tpu_custom_call.1
= control target key start
LH: loop header
LB: loop body
LE: loop exit
PB: predicated region body
PF: predicated region fallthrough
CT: control target
= control target key end

     0   :  { %s5917_s0 = inlined_call_operand.hbm [shape: bf16[2,16,16,128], index: 0, kind: input, shape index: {}]   ;;  %s5918_s1 = inlined_call_operand.hbm [shape: bf16[2,16,16,128], index: 1, kind: input, shape index: {}]   ;;  %s5919_s2 = inlined_call_operand.hbm [shape: bf16[2,16,16,128], index: 2, kind: input, shape index: {}]   ;;  %s5920_s3 = inlined_call_operand.hbm [shape: bf16[128,128], index: 3, kind: input, shape index: {}]   ;;  %s5921_s4 = inlined_call_operand.vmem [shape: f32[1,128], index: 4, kind: input, shape index: {}]   ;;  %s5922_s5 = inlined_call_operand.hbm [shape: bf16[3,3,128,128], index: 5, kind: input, shape index: {}]   ;;  %s5923_s6 = inlined_call_operand.vmem [shape: f32[1,128], index: 6, kind: input, shape index: {}]   ;;  %s5924_s7 = inlined_call_operand.hbm [shape: bf16[128,128], index: 7, kind: input, shape index: {}]   ;;  %s5925_s8 = inlined_call_operand.vmem [shape: f32[1,128], index: 8, kind: input, shape index: {}]   ;;  %s5926_s9 = inlined_call_operand.hbm [shape: bf16[2,16,16,128], index: 9, kind: output, shape index: {}]  }
   0x1   :  { %5958 = sst [smem:[#allocation39_spill]] %s5917_s0 }
   0x2   :  { %5959 = sst [smem:[#allocation40_spill]] %s5918_s1 }
   0x3   :  { %5960 = sst [smem:[#allocation41_spill]] %s5919_s2 }
   0x4   :  { %5961 = sst [smem:[#allocation42_spill]] %s5920_s3 }
   0x5   :  { %5962 = sst [smem:[#allocation43_spill]] %s5921_s4 }
   0x6   :  { %5963 = sst [smem:[#allocation44_spill]] %s5922_s5 }
   0x7   :  { %5964 = sst [smem:[#allocation45_spill]] %s5923_s6 }
   0x8   :  { %5965 = sst [smem:[#allocation46_spill]] %s5924_s7 }
   0x9   :  { %5966 = sst [smem:[#allocation47_spill]] %s5925_s8 }
   0xa   :  { %5967 = sst [smem:[#allocation48_spill]] %s5926_s9 }
   0xb   :  { %14 = vsyncpa [#allocation6], 0 }
   0xc   :  { %16 = vsyncpa [#allocation6 + $0x1], 0 }
   0xd   :  { %17 = vsyncpa [#allocation9], 0 }
   0xe   :  { %19 = vsyncpa [#allocation9 + $0x1], 0 }
   0xf   :  { %20 = vsyncpa [#allocation12], 0 }
  0x10   :  { %21 = vsyncpa [#allocation15], 0 }
  0x11   :  { %22 = vsyncpa [#allocation7], 0 }
  0x12   :  { %24 = vsyncpa [#allocation7 + $0x1], 0  ;;  %s4916_s30 = smov 0   ;;  %s4918_s10 = smov 0  }
  0x13   :  { %s4920_s11 = smov 0   ;;  %s4922_s12 = smov 0  }
  0x14   :  { %s4924_s13 = smov 0   ;;  %s4926_s14 = smov 0  }
  0x15   :  { %s4928_s15 = smov 0   ;;  %s4930_s16 = smov 0  }
  0x16   :  { %s4932_s17 = smov 0   ;;  %s4934_s18 = smov 0  }
  0x17   :  { %s4936_s19 = smov 0   ;;  %s4938_s20 = smov 0  }
  0x18   :  { %s4940_s21 = smov 0   ;;  %s4942_s22 = smov 0  }
  0x19 LB: > { %5968 = sst [smem:[#allocation23_spill]] %s4795_s30  ;;  %s4987_s23 = sadd.s32 4294967295, %s4847_s22   ;;  %s4847_s22 = sphi %s4942_s22, %s30_s22   ;;  %s4843_s21 = sphi %s4940_s21, %s6056_s21   ;;  %s4839_s20 = sphi %s4938_s20, %s6055_s20   ;;  %s4835_s19 = sphi %s4936_s19, %s6064_s19   ;;  %s4831_s18 = sphi %s4934_s18, %s6053_s18   ;;  %s4827_s17 = sphi %s4932_s17, %s6063_s17   ;;  %s4823_s16 = sphi %s4930_s16, %s6062_s16   ;;  %s4819_s15 = sphi %s4928_s15, %s6061_s15   ;;  %s4815_s14 = sphi %s4926_s14, %s6060_s14   ;;  %s4811_s13 = sphi %s4924_s13, %s6059_s13   ;;  %s4807_s12 = sphi %s4922_s12, %s6058_s12   ;;  %s4803_s11 = sphi %s4920_s11, %s6057_s11   ;;  %s4799_s10 = sphi %s4918_s10, %s6049_s10   ;;  %s4795_s30 = sphi %s4916_s30, %s6048_s30  }
  0x1a   : > { %5969 = sst [smem:[#allocation24_spill]] %s4799_s10  ;;  %p3276_p0 = scmp.ge.s32.totalorder %s4847_s22, 1 }
  0x1b   : > { %5970 = sst [smem:[#allocation25_spill]] %s4803_s11  ;;  %p5928_p1 = scmp.eq.s32.totalorder %s4987_s23, 0 }
  0x1c   : > { %5971 = sst [smem:[#allocation26_spill]] %s4811_s13  ;;  %p301_p3 = scmp.lt.s32.totalorder %s4847_s22, 5 }
  0x1d   : > { %5972 = sst [smem:[#allocation27_spill]] %s4831_s18  ;;  %s4849_s25 = smov [#allocation11]  }
  0x1e   : > { %5973 = sst [smem:[#allocation28_spill]] %s4835_s19  ;;  %p4993_p4 = pnand %p3276_p0, %p301_p3 }
  0x1f   : > { %5974 = sst [smem:[#allocation29_spill]] %s4839_s20  ;;  %s313_s26 = sshll.u32 %s4849_s25, 4  ;;  %s314_s26 = int_to_ptr.vmem [resolvable:$true] %s313_s26 }
  0x20   : > { %5975 = sst [smem:[#allocation30_spill]] %s4843_s21  ;;  %p4248_p5 = pneg %p4993_p4 }
  0x21   : > { %s5976_s24 = scalar_select %p4993_p4, 1, 0 }
  0x22   : > { %p5001_p6 = pnand %p4248_p5, %p5928_p1  ;;  %s5979_s3 = sld [smem:[#allocation42_spill]] }
  0x23   : > { %5977 = sst [smem:[#allocation31_spill]] %s5976_s24 }
  0x24   : > { %s5978_s27 = scalar_select %p5001_p6, 1, 0 }
  0x25   : > { %p5013_p8 = pneg %p5001_p6 }
  0x28   : > { %s4511_s9 = scalar_lea.hbm %s5979_s3, 1024 }
  0x29   : > { %p4512_p7 = scmp.ne.s32.totalorder %s5979_s3, %s4511_s9  ;;  %p4518_p11 = scmp.lt.u32.totalorder %s4511_s9, %s5979_s3 }
  0x2b   : > { %p4514_p9 = pnand %p5013_p8, %p4512_p7 }
  0x2d   : > { %p4515_p10 = pneg %p4514_p9 }
  0x2f   : > { %p4520_p12 = pnand %p4518_p11, %p4515_p10 }
  0x31   : > { %4523 = shalt.err (!%p4520_p12)
}
  0x32   : > { %s4524_s28 = scalar_lea.vmem %s314_s26, 1024  ;;  %p4532_p5 = scmp.lt.s32.totalorder %s314_s26, %s314_s26 }
  0x33   : > { %p4525_p13 = scmp.ne.s32.totalorder %s314_s26, %s4524_s28  ;;  %p4533_p2 = scmp.lt.s32.totalorder %s4524_s28, %s4524_s28 }
  0x35   : > { %p4527_p0 = pnand %p4525_p13, %p5013_p8  ;;  %p4534_p1 = por %p4533_p2, %p4532_p5 }
  0x37   : > { %p4528_p3 = pneg %p4527_p0 }
  0x39   : > { %p4535_p4 = pnand %p4534_p1, %p4528_p3 }
  0x3b   : > { %4538 = shalt.err (!%p4535_p4)
}
  0x3c   : > { %s5932_s8 = smov 64   ;;  %s5934_s6 = smov 4  }
  0x3d   : > { %4251 = dma.hbm_to_vmem [thread:$0]  (!%p5001_p6), %s5979_s3, 1024, %s314_s26, [#allocation12], %s5932_s8, %s5932_s8, %s5934_s6  }
  0x3e   : > { %s39_s19 = sadd.s32 1, %s4839_s20  ;;  %s42_s29 = sadd.s32 1, %s4843_s21 }
  0x3f   : > { %p40_p1 = scmp.ge.s32.totalorder %s39_s19, 2  ;;  %p5948_p2 = scmp.eq.s32.totalorder %s4847_s22, 0 }
  0x40   : > { %s3270_s28 = sshll.u32 %s4839_s20, 3  ;;  %s87_s4 = sadd.s32 1, %s4815_s14 }
  0x41   : > { %s6066_s19 = smov (%p40_p1, %s39_s19), 0  ;;  %s6068_s29 = smov (!%p40_p1, %s42_s29), %s4843_s21 }
  0x42   : > { %5981 = sst [smem:[#allocation32_spill]] %s6066_s19  ;;  %s47_s24 = ssub.s32 %s4839_s20, %s6066_s19 }
  0x43   : > { %s3271_s2 = sadd.s32 4294967295, %s3270_s28  ;;  %p44_p4 = scmp.ge.s32.totalorder %s6068_s29, 2 }
  0x44   : > { %p76_p7 = scmp.gt.s32.totalorder %s3271_s2, 0  ;;  %s3272_s26 = sshll.u32 %s6066_s19, 3 }
  0x45   : > { %p94_p9 = scmp.ne.s32.totalorder %s4815_s14, %s4811_s13  ;;  %s6070_s29 = smov (%p44_p4, %s6068_s29), 0 }
  0x46   : > { %5982 = sst [smem:[#allocation33_spill]] %s6070_s29  ;;  %s6072_s2 = smov (!%p76_p7, %s3271_s2), 0 }
  0x47   : > { %s5049_s9 = ssub.s32 %s4843_s21, %s6070_s29  ;;  %s3273_s18 = sadd.s32 4294967295, %s3272_s26 }
  0x48   : > { %5983 = sst [smem:[#allocation34_spill]] %s5049_s9  ;;  %s5052_s8 = sor.u32 %s47_s24, %s5049_s9 }
  0x49   : > { %p80_p10 = scmp.gt.s32.totalorder %s3273_s18, 0  ;;  %p5057_p12 = por %p94_p9, %p5948_p2 }
  0x4a   : > { %p100_p13 = scmp.ne.s32.totalorder %s4811_s13, %s4807_s12  ;;  %s5063_s3 = sadd.s32 8, %s3270_s28 }
  0x4b   : > { %s6074_s18 = smov (!%p80_p10, %s3273_s18), 0  ;;  %5985 = sst [smem:[#allocation35_spill]] %s5063_s3 }
  0x4c   : > { %s83_s29 = ssub.s32 %s6072_s2, %s6074_s18  ;;  %p5986_p3 = scmp.eq.s32.totalorder %s4987_s23, 0 }
  0x4d   : > { %s84_s24 = sor.u32 %s83_s29, %s5049_s9  ;;  %s5073_s30 = sadd.s32 8, %s3272_s26 }
  0x4e   : > { %p5069_p5 = por %p100_p13, %p5986_p3  ;;  %p85_p1 = scmp.eq.s32.totalorder %s84_s24, 0 }
  0x4f   : > { %p5947_p7 = scmp.lt.s32.totalorder %s4847_s22, 4  ;;  %s5081_s28 = sshll.u32 %s4843_s21, 5 }
  0x50   : > { %s5987_s19 = scalar_select %p5069_p5, 1, 0 }
  0x51   : > { %s5078_s12 = scalar_select %p85_p1, %s4815_s14, %s87_s4  }
  0x52   : > { %5988 = sst [smem:[#allocation36_spill]] %s5987_s19  ;;  %s386_s18 = sand.u32 1, %s4847_s22  }
  0x53   : > { %s388_s29 = sand.u32 1, %s4815_s14   ;;  %s3289_s9 = sshll.u32 %s6072_s2, 1 }
  0x54   : > { %s3286_s13 = sshll.u32 %s388_s29, 3  ;;  %s400_s10 = sadd.s32 %s3289_s9, %s5081_s28 }
  0x55   : > { %s3291_s3 = sshll.u32 %s400_s10, 6  ;;  %s390_s19 = scalar_lea.vmem [#allocation8], %s3286_s13 }
  0x56   : > { %s403_s24 = sshll.u32 %s390_s19, 4  ;;  %s5989_s1 = sld [smem:[#allocation40_spill]]  ;;  %s5091_s24 = int_to_ptr.vmem [resolvable:$true] %s403_s24 }
  0x57   : > { %p5097_p9 = pnand %p5947_p7, %p5057_p12  ;;  %s4852_s2 = smov [#allocation13]  }
  0x58   : > { %s329_s10 = sshll.u32 %s4852_s2, 4  ;;  %s5103_s0 = scalar_lea.sflag [#allocation9], %s386_s18  ;;  %s5101_s10 = int_to_ptr.vmem [resolvable:$true] %s329_s10 }
  0x59   : > { %p4541_p13 = pneg %p5097_p9 }
  0x5c   : > { %s5089_s26 = scalar_lea.hbm %s5989_s1, %s3291_s3  ;;  %s4544_s6 = scalar_lea.hbm %s5989_s1, 4096 }
  0x5d   : > { %s4539_s3 = scalar_lea.hbm %s5089_s26, 128  ;;  %p4545_p12 = scmp.lt.u32.totalorder %s5089_s26, %s5989_s1 }
  0x5e   : > { %p4540_p10 = scmp.ne.s32.totalorder %s5089_s26, %s4539_s3  ;;  %p4546_p4 = scmp.lt.u32.totalorder %s4544_s6, %s4539_s3 }
  0x5f   : > { %p4548_p7 = scmp.lt.u32.totalorder %s4539_s3, %s5089_s26 }
  0x60   : > { %p4542_p3 = pnand %p4541_p13, %p4540_p10  ;;  %p4547_p0 = por %p4546_p4, %p4545_p12 }
  0x62   : > { %p4543_p1 = pneg %p4542_p3  ;;  %p4549_p2 = por %p4548_p7, %p4547_p0 }
  0x64   : > { %p4550_p11 = pnand %p4549_p2, %p4543_p1 }
  0x66   : > { %4553 = shalt.err (!%p4550_p11)
}
  0x67   : > { %s4554_s18 = scalar_lea.vmem %s5091_s24, 128  ;;  %s4853_s29 = smov [#allocation8]  }
  0x68   : > { %p4555_p10 = scmp.ne.s32.totalorder %s5091_s24, %s4554_s18  ;;  %s4559_s2 = sshll.u32 %s4853_s29, 4  ;;  %s4560_s2 = int_to_ptr.vmem [resolvable:$false] %s4559_s2 }
  0x69   : > { %s4561_s11 = scalar_lea.vmem %s4560_s2, 256  ;;  %p4562_p6 = scmp.lt.s32.totalorder %s5091_s24, %s4560_s2 }
  0x6a   : > { %p4557_p3 = pnand %p4555_p10, %p4541_p13  ;;  %p4563_p4 = scmp.lt.s32.totalorder %s4561_s11, %s4554_s18 }
  0x6c   : > { %p4558_p5 = pneg %p4557_p3  ;;  %p4564_p12 = por %p4563_p4, %p4562_p6 }
  0x6e   : > { %p4565_p0 = pnand %p4564_p12, %p4558_p5 }
  0x70   : > { %4568 = shalt.err (!%p4565_p0)
}
  0x71   : > { %s5991_s3 = smov 4   ;;  %s5992_s13 = smov 64  }
  0x72   : > { %4264 = dma.hbm_to_vmem [thread:$0]  (!%p5097_p9), %s5089_s26, 128, %s5091_s24, %s5103_s0, %s5992_s13, %s5992_s13, %s5991_s3  }
  0x73   : > { %s5993_s5 = sld [smem:[#allocation44_spill]] }
  0x79   : > { %s4569_s9 = scalar_lea.hbm %s5993_s5, 9216 }
  0x7a   : > { %p4570_p6 = scmp.ne.s32.totalorder %s5993_s5, %s4569_s9  ;;  %p4576_p5 = scmp.lt.u32.totalorder %s4569_s9, %s5993_s5 }
  0x7c   : > { %p4572_p2 = pnand %p4570_p6, %p5013_p8 }
  0x7e   : > { %p4573_p11 = pneg %p4572_p2 }
  0x80   : > { %p4578_p7 = pnand %p4576_p5, %p4573_p11 }
  0x82   : > { %4581 = shalt.err (!%p4578_p7)
}
  0x83   : > { %s4582_s24 = scalar_lea.vmem %s5101_s10, 9216  ;;  %p4590_p10 = scmp.lt.s32.totalorder %s5101_s10, %s5101_s10 }
  0x84   : > { %p4583_p9 = scmp.ne.s32.totalorder %s5101_s10, %s4582_s24  ;;  %p4591_p3 = scmp.lt.s32.totalorder %s4582_s24, %s4582_s24 }
  0x86   : > { %p4585_p13 = pnand %p4583_p9, %p5013_p8  ;;  %p4592_p4 = por %p4591_p3, %p4590_p10 }
  0x88   : > { %p4586_p1 = pneg %p4585_p13 }
  0x8a   : > { %p4593_p12 = pnand %p4592_p4, %p4586_p1 }
  0x8c   : > { %4596 = shalt.err (!%p4593_p12)
}
  0x8d   : > { %p5994_p0 = scmp.ne.s32.totalorder %s5978_s27, 0  ;;  %s4854_s6 = smov [#allocation14]  }
  0x8e   : > { %s345_s19 = sshll.u32 %s4854_s6, 4  ;;  %s5995_s7 = sld [smem:[#allocation46_spill]]  ;;  %s346_s19 = int_to_ptr.vmem [resolvable:$true] %s345_s19 }
  0x8f   : > { %4254 = dma.hbm_to_vmem [thread:$0]  (!%p5994_p0), %s5993_s5, 9216, %s5101_s10, [#allocation12], %s5992_s13, %s5992_s13, %s5991_s3  }
  0x94   : > { %s4597_s2 = scalar_lea.hbm %s5995_s7, 1024 }
  0x95   : > { %p4598_p6 = scmp.ne.s32.totalorder %s5995_s7, %s4597_s2  ;;  %p4604_p5 = scmp.lt.u32.totalorder %s4597_s2, %s5995_s7 }
  0x97   : > { %p4600_p2 = pnand %p4598_p6, %p5013_p8 }
  0x99   : > { %p4601_p11 = pneg %p4600_p2 }
  0x9b   : > { %p4606_p7 = pnand %p4604_p5, %p4601_p11 }
  0x9d   : > { %4609 = shalt.err (!%p4606_p7)
}
  0x9e   : > { %s4610_s10 = scalar_lea.vmem %s346_s19, 1024  ;;  %p4618_p10 = scmp.lt.s32.totalorder %s346_s19, %s346_s19 }
  0x9f   : > { %p4611_p9 = scmp.ne.s32.totalorder %s346_s19, %s4610_s10  ;;  %p4619_p3 = scmp.lt.s32.totalorder %s4610_s10, %s4610_s10 }
  0xa1   : > { %p4613_p13 = pnand %p4611_p9, %p5013_p8  ;;  %p4620_p4 = por %p4619_p3, %p4618_p10 }
  0xa3   : > { %p4614_p1 = pneg %p4613_p13 }
  0xa5   : > { %p4621_p12 = pnand %p4620_p4, %p4614_p1 }
  0xa7   : > { %4624 = shalt.err (!%p4621_p12)
}
  0xa8   : > { %4257 = dma.hbm_to_vmem [thread:$0]  (!%p5994_p0), %s5995_s7, 1024, %s346_s19, [#allocation15], %s5992_s13, %s5992_s13, %s5991_s3  }
  0xa9   : > { %s3269_s27 = sadd.s32 4294967294, %s4847_s22   ;;  %s51_s25 = sadd.s32 1, %s4827_s17 }
  0xaa   : > { %p5996_p8 = scmp.eq.s32.totalorder %s5052_s8, 0  ;;  %p58_p6 = scmp.ne.s32.totalorder %s4827_s17, %s4823_s16 }
  0xab   : > { %p64_p2 = scmp.ne.s32.totalorder %s4823_s16, %s4819_s15  ;;  %p294_p11 = scmp.eq.s32.totalorder %s3269_s27, 3 }
  0xac   : > { %s5186_s11 = scalar_select %p5996_p8, %s4827_s17, %s51_s25  }
  0xad   : > { %s362_s6 = sand.u32 1, %s4827_s17   ;;  %p5998_p5 = scmp.eq.s32.totalorder %s4847_s22, 0 }
  0xae   : > { %5997 = sst [smem:[#allocation37_spill]] %s5186_s11  ;;  %p5999_p9 = scmp.eq.s32.totalorder %s4987_s23, 0 }
  0xaf   : > { %p60_p7 = por %p5998_p5, %p58_p6  ;;  %p6001_p1 = scmp.eq.s32.totalorder %s4987_s23, 3 }
  0xb0   : > { %p5197_p13 = por %p5999_p9, %p64_p2  ;;  %p5207_p0 = por %p294_p11, %p64_p2 }
  0xb1   : > { %p5203_p10 = por %p6001_p1, %p58_p6  ;;  %s3281_s29 = sshll.u32 %s362_s6, 6 }
  0xb2   : > { %s6003_s8 = scalar_select %p5207_p0, 1, 0 }
  0xb3   : > { %s6002_s19 = scalar_select %p5203_p10, 1, 0 }
  0xb4   : > { %6004 = sst [smem:[#allocation38_spill]] %s6003_s8  ;;  %s3433_s2 = sshll.u32 %s4839_s20, 4 }
  0xb5   : > { %s373_s4 = sadd.s32 %s3433_s2, %s5081_s28  ;;  %s366_s18 = scalar_lea.vmem [#allocation5], %s3281_s29 }
  0xb6   : > { %s376_s24 = sshll.u32 %s366_s18, 4  ;;  %s3285_s10 = sshll.u32 %s373_s4, 6  ;;  %s5213_s24 = int_to_ptr.vmem [resolvable:$true] %s376_s24 }
  0xb7   : > { %s6005_s27 = sld [smem:[#allocation39_spill]]  ;;  %p6006_p3 = scmp.lt.s32.totalorder %s4847_s22, 4 }
  0xb8   : > { %s5226_s29 = scalar_lea.sflag [#allocation6], %s362_s6 }
  0xb9   : > { %p5222_p4 = pnand %p6006_p3, %p60_p7 }
  0xbb   : > { %p4627_p8 = pneg %p5222_p4 }
  0xbd   : > { %s5218_s25 = scalar_lea.hbm %s6005_s27, %s3285_s10  ;;  %s4630_s10 = scalar_lea.hbm %s6005_s27, 4096 }
  0xbe   : > { %s4625_s2 = scalar_lea.hbm %s5218_s25, 1024  ;;  %p4631_p11 = scmp.lt.u32.totalorder %s5218_s25, %s6005_s27 }
  0xbf   : > { %p4626_p12 = scmp.ne.s32.totalorder %s5218_s25, %s4625_s2  ;;  %p4632_p5 = scmp.lt.u32.totalorder %s4630_s10, %s4625_s2 }
  0xc0   : > { %p4634_p9 = scmp.lt.u32.totalorder %s4625_s2, %s5218_s25 }
  0xc1   : > { %p4628_p6 = pnand %p4627_p8, %p4626_p12  ;;  %p4633_p7 = por %p4632_p5, %p4631_p11 }
  0xc3   : > { %p4629_p2 = pneg %p4628_p6  ;;  %p4635_p1 = por %p4634_p9, %p4633_p7 }
  0xc5   : > { %p4636_p3 = pnand %p4635_p1, %p4629_p2 }
  0xc7   : > { %4639 = shalt.err (!%p4636_p3)
}
  0xc8   : > { %s4640_s6 = scalar_lea.vmem %s5213_s24, 1024  ;;  %s4855_s4 = smov [#allocation5]  }
  0xc9   : > { %p4641_p12 = scmp.ne.s32.totalorder %s5213_s24, %s4640_s6  ;;  %s4645_s18 = sshll.u32 %s4855_s4, 4  ;;  %s4646_s18 = int_to_ptr.vmem [resolvable:$false] %s4645_s18 }
  0xca   : > { %s4647_s1 = scalar_lea.vmem %s4646_s18, 2048  ;;  %p4648_p10 = scmp.lt.s32.totalorder %s5213_s24, %s4646_s18 }
  0xcb   : > { %p4643_p6 = pnand %p4641_p12, %p4627_p8  ;;  %p4649_p11 = scmp.lt.s32.totalorder %s4647_s1, %s4640_s6 }
  0xcd   : > { %p4644_p0 = pneg %p4643_p6  ;;  %p4650_p5 = por %p4649_p11, %p4648_p10 }
  0xcf   : > { %p4651_p7 = pnand %p4650_p5, %p4644_p0 }
  0xd1   : > { %4654 = shalt.err (!%p4651_p7)
}
  0xd2   : > { %s6008_s2 = sld [smem:[#allocation25_spill]]  ;;  %s6009_s10 = sld [smem:[#allocation35_spill]] }
  0xd3   : > { %s6010_s26 = sld [smem:[#allocation24_spill]]  ;;  %s6012_s6 = sld [smem:[#allocation34_spill]] }
  0xd4   : > { %s6011_s4 = sld [smem:[#allocation23_spill]]  ;;  %p6014_p0 = scmp.lt.s32.totalorder %s5073_s30, 15 }
  0xd5   : > { %4261 = dma.hbm_to_vmem [thread:$0]  (!%p5222_p4), %s5218_s25, 1024, %s5213_s24, %s5226_s29, %s5992_s13, %s5992_s13, %s5991_s3  }
  0xd6   : > { %s6078_s30 = smov (!%p6014_p0, %s5073_s30), 15  ;;  %p6015_p9 = scmp.eq.s32.totalorder %s4847_s22, 0 }
  0xd7   : > { %p6016_p12 = scmp.eq.s32.totalorder %s4987_s23, 0  ;;  %s6018_s11 = sld [smem:[#allocation41_spill]] }
  0xd8   : > { %s123_s5 = sadd.s32 1, %s6008_s2  ;;  %p6013_p10 = scmp.lt.s32.totalorder %s6009_s10, 15 }
  0xd9   : > { %p130_p8 = scmp.ne.s32.totalorder %s6008_s2, %s6010_s26  ;;  %s415_s1 = sand.u32 1, %s6008_s2  }
  0xda   : > { %s6076_s10 = smov (!%p6013_p10, %s6009_s10), 15  ;;  %p136_p2 = scmp.ne.s32.totalorder %s6010_s26, %s6011_s4 }
  0xdb   : > { %s119_s18 = ssub.s32 %s6076_s10, %s6078_s30  ;;  %p132_p1 = por %p130_p8, %p6015_p9 }
  0xdc   : > { %s120_s7 = sor.u32 %s119_s18, %s6012_s6  ;;  %p5274_p6 = por %p136_p2, %p6016_p12 }
  0xdd   : > { %p121_p3 = scmp.eq.s32.totalorder %s120_s7, 0  ;;  %s3292_s24 = sshll.u32 %s415_s1, 3 }
  0xde   : > { %s6017_s27 = scalar_select %p5274_p6, 1, 0 }
  0xdf   : > { %s3294_s25 = sshll.u32 %s6076_s10, 1  ;;  %s6080_s2 = smov (!%p121_p3, %s6008_s2), %s123_s5 }
  0xe0   : > { %s427_s29 = sadd.s32 %s3294_s25, %s5081_s28  ;;  %s417_s20 = scalar_lea.vmem [#allocation10], %s3292_s24 }
  0xe1   : > { %s3296_s21 = sshll.u32 %s427_s29, 6  ;;  %s430_s26 = sshll.u32 %s417_s20, 4  ;;  %s5287_s26 = int_to_ptr.vmem [resolvable:$true] %s430_s26 }
  0xe2   : > { %s6019_s8 = smov %s6018_s11  ;;  %s5285_s6 = scalar_lea.hbm %s6018_s11, %s3296_s21 }
  0xe3   : > { %p6020_p4 = scmp.lt.s32.totalorder %s4847_s22, 4  ;;  %s4655_s28 = scalar_lea.hbm %s5285_s6, 128 }
  0xe4   : > { %p4656_p5 = scmp.ne.s32.totalorder %s5285_s6, %s4655_s28  ;;  %s4660_s11 = scalar_lea.hbm %s6019_s8, 4096 }
  0xe5   : > { %p5291_p11 = pnand %p6020_p4, %p132_p1  ;;  %p4661_p8 = scmp.lt.u32.totalorder %s5285_s6, %s6019_s8 }
  0xe6   : > { %p4662_p2 = scmp.lt.u32.totalorder %s4660_s11, %s4655_s28  ;;  %p4664_p1 = scmp.lt.u32.totalorder %s4655_s28, %s5285_s6 }
  0xe7   : > { %p4657_p7 = pneg %p5291_p11 }
  0xe8   : > { %p4663_p9 = por %p4662_p2, %p4661_p8 }
  0xe9   : > { %p4658_p10 = pnand %p4657_p7, %p4656_p5 }
  0xea   : > { %p4665_p3 = por %p4664_p1, %p4663_p9 }
  0xeb   : > { %p4659_p0 = pneg %p4658_p10 }
  0xed   : > { %p4666_p12 = pnand %p4665_p3, %p4659_p0 }
  0xef   : > { %4669 = shalt.err (!%p4666_p12)
}
  0xf0   : > { %s4670_s18 = scalar_lea.vmem %s5287_s26, 128  ;;  %s4856_s1 = smov [#allocation10]  }
  0xf1   : > { %p4671_p4 = scmp.ne.s32.totalorder %s5287_s26, %s4670_s18  ;;  %s4675_s24 = sshll.u32 %s4856_s1, 4  ;;  %s4676_s24 = int_to_ptr.vmem [resolvable:$false] %s4675_s24 }
  0xf2   : > { %s4677_s25 = scalar_lea.vmem %s4676_s24, 256  ;;  %p4678_p6 = scmp.lt.s32.totalorder %s5287_s26, %s4676_s24 }
  0xf3   : > { %p4673_p5 = pnand %p4671_p4, %p4657_p7  ;;  %p4679_p8 = scmp.lt.s32.totalorder %s4677_s25, %s4670_s18 }
  0xf5   : > { %p4674_p10 = pneg %p4673_p5  ;;  %p4680_p2 = por %p4679_p8, %p4678_p6 }
  0xf7   : > { %p4681_p9 = pnand %p4680_p2, %p4674_p10 }
  0xf9   : > { %4684 = shalt.err (!%p4681_p9)
}
  0xfa   : > { %4267 = dma.hbm_to_vmem [thread:$0]  (!%p5291_p11), %s5285_s6, 128, %s5287_s26, %s5103_s0, %s5992_s13, %s5992_s13, %s5991_s3  }
  0xfb   : > { %s6022_s29 = sld [smem:[#allocation31_spill]] }
 0x101   : > { %p6023_p7 = scmp.ne.s32.totalorder %s6022_s29, 0 }
 0x102   : > { %s5327_s4 = sand.u32 (!%p6023_p7), 1, %s4823_s16  }
 0x103   : > { %442 = sbr.rel (%p6023_p7) target bundleno = 1773 (0x6ed), region = 56  ;;  %s3298_s30 = sshll.u32 (!%p6023_p7), %s5327_s4, 6 }
 0x104   : > { %s445_s28 = scalar_lea.sflag (!%p6023_p7), [#allocation6], %s5327_s4  ;;  %s5333_s7 = scalar_lea.vmem (!%p6023_p7), [#allocation5], %s3298_s30 }
 0x10a   : > { %4770 = dma.done.wait (%p5197_p13), %s445_s28, 1024  }
 0x10b   : > { %4772 = vsyncadd (%p5197_p13), %s445_s28, 4294966272  ;;  %s6024_s0 = sld [smem:[#allocation26_spill]]  ;;  %s6025_s3 = sld [smem:[#allocation36_spill]] }
 0x10c   : > { %s453_s13 = sand.u32 1, %s4987_s23  }
 0x10d   : > { %s454_s20 = scalar_lea.sflag [#allocation9], %s453_s13 }
 0x111   : > { %s455_s26 = sand.u32 1, %s6024_s0   ;;  %p6026_p6 = scmp.ne.s32.totalorder %s6025_s3, 0 }
 0x112   : > { %s5341_s6 = sshll.u32 %s455_s26, 3 }
 0x113   : > { %s457_s21 = scalar_lea.vmem [#allocation8], %s5341_s6 }
 0x114   : > { %4774 = dma.done.wait (%p6026_p6), %s454_s20, 128  }
 0x115   : > { %4776 = vsyncadd (%p6026_p6), %s454_s20, 4294967168  ;;  %s6027_s11 = sld [smem:[#allocation24_spill]]  ;;  %p6028_p13 = scmp.ne.s32.totalorder %s6017_s27, 0 }
 0x11b   : > { %s464_s10 = sand.u32 1, %s6027_s11  }
 0x11c   : > { %s5349_s9 = sshll.u32 %s464_s10, 3 }
 0x11d   : > { %s466_s5 = scalar_lea.vmem [#allocation10], %s5349_s9 }
 0x11e   : > { %4778 = dma.done.wait (%p6028_p13), %s454_s20, 128  }
 0x11f   : > { %4780 = vsyncadd (%p6028_p13), %s454_s20, 4294967168  ;;  %p6029_p11 = scmp.eq.s32.totalorder %s4987_s23, 0 }
 0x121   : > { %4782 = dma.done.wait (%p6029_p11), [#allocation12], 10240   ;;  %p6030_p0 = pmov %p6029_p11 }
 0x123   : > { %4784 = vsyncadd (%p6030_p0), [#allocation12], 4294957056  ;;  %p6031_p1 = pmov %p6030_p0 }
 0x124   : > { %p6032_p3 = pmov %p6030_p0 }
 0x125   : > { %4786 = dma.done.wait (%p6031_p1), [#allocation15], 1024  }
 0x126   : > { %4788 = vsyncadd (%p6032_p3), [#allocation15], 4294966272  ;;  %v5364_v0 = vld [vmem:[#allocation11] sm:$0xff]   ;;  %v5366_v1 = vld [vmem:[#allocation11 + $0x8] sm:$0xff]   ;;  %v551_v16 = vlaneseq  ;;  %s6033_s18 = sld [smem:[#allocation43_spill]]  ;;  %s5596_s1 = scalar_lea.vmem [#allocation16], %s3298_s30 }
 0x127   : > { %3692 = vmatprep.subr.bf16.mxu0 %v5364_v0  ;;  %4084 = vmatprep.subr.bf16.mxu1 %v5364_v0  ;;  %v5374_v2 = vld [vmem:[#allocation11 + $0x10] sm:$0xff]   ;;  %v5380_v3 = vld [vmem:[#allocation11 + $0x18] sm:$0xff]   ;;  %v5383_v4 = vld [vmem:[%s5333_s7] sm:$0xff]   ;;  %s6034_s24 = sld [smem:[#allocation27_spill]] }
 0x128   : > { %3693 = vmatpush3.bf16.msra.mxu0 %v5364_v0  ;;  %4092 = vmatpush3.bf16.msra.mxu1 %v5364_v0  ;;  %v5386_v5 = vld [vmem:[%s5333_s7 + $0x20] sm:$0xff]   ;;  %v5400_v7 = vld [vmem:[#allocation11 + $0x28] sm:$0xff]   ;;  %v5406_v8 = vld [vmem:[#allocation11 + $0x30] sm:$0xff]   ;;  %v5444_v17 = vshrl.u32 %v551_v16, 7 }
 0x129   : > { %3694 = vmatprep.subr.bf16.mxu0 %v5366_v1  ;;  %4085 = vmatprep.subr.bf16.mxu1 %v5366_v1  ;;  %v5392_v6 = vld [vmem:[#allocation11 + $0x20] sm:$0xff]   ;;  %v5412_v9 = vld [vmem:[#allocation11 + $0x38] sm:$0xff]   ;;  %v5417_v10 = vld [vmem:[%s5333_s7 + $0x8] sm:$0xff]  }
 0x12a   : > { %3708 = vmatprep.mubr.bf16.mxu0 %v5383_v4  ;;  %3716 = vmatprep.mubr.bf16.mxu1 %v5386_v5  ;;  %v5420_v11 = vld [vmem:[%s5333_s7 + $0x28] sm:$0xff]   ;;  %v5425_v12 = vld [vmem:[%s5333_s7 + $0x10] sm:$0xff]   ;;  %v5437_v14 = vld [vmem:[%s5333_s7 + $0x18] sm:$0xff]   ;;  %v5454_v25 = vadd.s32 8, %v5444_v17  ;;  %vm554_vm0 = vcmp.gt.s32.totalorder %v5444_v17, 0  ;;  %vm805_vm2 = vcmp.lt.s32.totalorder %v5444_v17, 1 }
 0x12b   : > { %v5428_v13 = vld [vmem:[%s5333_s7 + $0x30] sm:$0xff]   ;;  %v5440_v15 = vld [vmem:[%s5333_s7 + $0x38] sm:$0xff]   ;;  %vm858_vm3 = vcmp.lt.s32.totalorder %v5444_v17, 7 }
 0x12c   : > { %3695 = vmatpush3.bf16.msra.mxu0 %v5366_v1  ;;  %4093 = vmatpush3.bf16.msra.mxu1 %v5366_v1  ;;  %v5449_v18 = vld [vmem:[%s6033_s18] ss:$0 sm:$0xff]  ;;  %vm557_vm1 = vcmp.lt.s32.totalorder %v5454_v25, 15 }
 0x12d   : > { %3696 = vmatprep.subr.bf16.mxu0 %v5374_v2  ;;  %4086 = vmatprep.subr.bf16.mxu1 %v5374_v2  ;;  %p3322_p12 = scmp.le.s32.totalorder %s6034_s24, 0 }
 0x12e   : > { %vm4858_vm4 = vmmov (!%p3322_p12), 0  }
 0x130   : > { %3697 = vmatpush3.bf16.msra.mxu0 %v5374_v2  ;;  %4094 = vmatpush3.bf16.msra.mxu1 %v5374_v2 }
 0x131   : > { %3698 = vmatprep.subr.bf16.mxu0 %v5380_v3  ;;  %4087 = vmatprep.subr.bf16.mxu1 %v5380_v3 }
 0x134   : > { %3699 = vmatpush3.bf16.msra.mxu0 %v5380_v3  ;;  %4095 = vmatpush3.bf16.msra.mxu1 %v5380_v3 }
 0x135   : > { %3700 = vmatprep.subr.bf16.mxu0 %v5392_v6  ;;  %4088 = vmatprep.subr.bf16.mxu1 %v5392_v6 }
 0x138   : > { %3701 = vmatpush3.bf16.msra.mxu0 %v5392_v6  ;;  %4096 = vmatpush3.bf16.msra.mxu1 %v5392_v6 }
 0x139   : > { %3702 = vmatprep.subr.bf16.mxu0 %v5400_v7  ;;  %4089 = vmatprep.subr.bf16.mxu1 %v5400_v7 }
 0x13c   : > { %3703 = vmatpush3.bf16.msra.mxu0 %v5400_v7  ;;  %4097 = vmatpush3.bf16.msra.mxu1 %v5400_v7 }
 0x13d   : > { %3704 = vmatprep.subr.bf16.mxu0 %v5406_v8  ;;  %4090 = vmatprep.subr.bf16.mxu1 %v5406_v8 }
 0x140   : > { %3705 = vmatpush3.bf16.msra.mxu0 %v5406_v8  ;;  %4098 = vmatpush3.bf16.msra.mxu1 %v5406_v8 }
 0x141   : > { %3706 = vmatprep.subr.bf16.mxu0 %v5412_v9  ;;  %4091 = vmatprep.subr.bf16.mxu1 %v5412_v9 }
 0x144   : > { %3707 = vmatpush3.bf16.msra.mxu0 %v5412_v9  ;;  %4099 = vmatpush3.bf16.msra.mxu1 %v5412_v9 }
 0x147   : > { %3709 = vmatmul.mubr.bf16.vlgmr.msra.gmra.mrb[0].mxu0 %v5417_v10  ;;  %3717 = vmatmul.mubr.bf16.vlgmr.msra.gmra.mrb[0].mxu1 %v5420_v11 }
 0x148   : > { %3712 = vmatprep.mubr.bf16.mxu0 %v5425_v12  ;;  %3720 = vmatprep.mubr.bf16.mxu1 %v5428_v13 }
 0x14f   : > { %3713 = vmatmul.mubr.bf16.gmra.mrb[4].mxu0 %v5437_v14  ;;  %3721 = vmatmul.mubr.bf16.gmra.mrb[4].mxu1 %v5440_v15 }
 0x21a   : > { %v3710_v19 = vpop.f32.mrb[0].mxu0  ;;  %v3718_v20 = vpop.f32.mrb[0].mxu1 }
 0x21b   : > { %v719_v21 = vadd.f32 %v3710_v19, %v5449_v18  ;;  %v751_v22 = vadd.f32 %v3718_v20, %v5449_v18  ;;  %v710_v23 = vpop.f32.mrb[1].mxu0  ;;  %v742_v24 = vpop.f32.mrb[1].mxu1 }
 0x21c   : > { %v711_v26 = vadd.f32 %v5449_v18, %v710_v23  ;;  %v743_v27 = vadd.f32 %v5449_v18, %v742_v24  ;;  %v3711_v28 = vpop.f32.mrb[2].mxu0  ;;  %v3719_v29 = vpop.f32.mrb[2].mxu1 }
 0x21d   : > { %v775_v30 = vmax.f32 %v719_v21, 0.0  ;;  %v783_v31 = vmax.f32 %v751_v22, 0.0  ;;  %v722_v32 = vadd.f32 %v3711_v28, %v5449_v18  ;;  %v754_v33 = vadd.f32 %v3719_v29, %v5449_v18  ;;  %v713_v34 = vpop.f32.mrb[3].mxu0  ;;  %v745_v35 = vpop.f32.mrb[3].mxu1 }
 0x21e   : > { %v5460_v36 = vmax.f32 %v711_v26, 0.0  ;;  %v5462_v37 = vmax.f32 %v743_v27, 0.0  ;;  %v714_v38 = vadd.f32 %v5449_v18, %v713_v34  ;;  %v746_v39 = vadd.f32 %v5449_v18, %v745_v35 }
 0x21f   : > { %v790_v40 = vrot.slane %v775_v30, 7  ;;  %v843_v41 = vrot.slane %v775_v30, 1  ;;  %v794_v42 = vrot.slane %v783_v31, 7  ;;  %v847_v43 = vrot.slane %v783_v31, 1 }
 0x220   : > { %v789_v44 = vrot.slane %v5460_v36, 7  ;;  %v776_v45 = vmax.f32 %v722_v32, 0.0  ;;  %v784_v46 = vmax.f32 %v754_v33, 0.0  ;;  %v774_v47 = vmax.f32 %v714_v38, 0.0 }
 0x221   : > { %v842_v48 = vrot.slane %v5460_v36, 1  ;;  %v793_v49 = vrot.slane %v5462_v37, 7  ;;  %v846_v50 = vrot.slane %v5462_v37, 1  ;;  %v5474_v51 = vmax.f32 %v746_v39, 0.0 }
 0x222   : > { %v3714_v52 = vpop.f32.mrb[4].mxu0  ;;  %v3722_v53 = vpop.f32.mrb[4].mxu1  ;;  %v798_v54 = vrot.slane %v776_v45, 7  ;;  %v851_v55 = vrot.slane %v776_v45, 1  ;;  %v896_v56 = vpack.c.bf16 %v776_v45, %v775_v30  ;;  %v802_v57 = vrot.slane %v784_v46, 7 }
 0x223   : > { %v726_v58 = vpop.f32.mrb[5].mxu0  ;;  %v758_v59 = vpop.f32.mrb[5].mxu1  ;;  %v855_v60 = vrot.slane %v784_v46, 1  ;;  %v900_v61 = vpack.c.bf16 %v784_v46, %v783_v31  ;;  %v797_v62 = vrot.slane %v774_v47, 7  ;;  %v850_v63 = vrot.slane %v774_v47, 1 }
 0x224   : > { %v3715_v16 = vpop.f32.mrb[6].mxu0  ;;  %v3723_v19 = vpop.f32.mrb[6].mxu1  ;;  %v807_v20 = vsel %vm805_vm2, %v790_v40, %v798_v54  ;;  %v815_v21 = vsel %vm805_vm2, %v798_v54, %v790_v40  ;;  %v860_v22 = vsel %vm858_vm3, %v843_v41, %v851_v55  ;;  %v868_v23 = vsel %vm858_vm3, %v851_v55, %v843_v41  ;;  %905 = vst [vmem:[#allocation2 + $0x10] sm:$0xff] %v896_v56 }
 0x225   : > { %v729_v24 = vpop.f32.mrb[7].mxu0  ;;  %v761_v26 = vpop.f32.mrb[7].mxu1  ;;  %v828_v27 = vsel %vm554_vm0, %v815_v21, 0.0  ;;  %v882_v28 = vsel %vm557_vm1, %v868_v23, 0.0  ;;  %v811_v29 = vsel %vm805_vm2, %v794_v42, %v802_v57  ;;  %v819_v30 = vsel %vm805_vm2, %v802_v57, %v794_v42  ;;  %909 = vst [vmem:[#allocation2 + $0x30] sm:$0xff] %v900_v61 }
 0x226   : > { %v913_v31 = vpack.c.bf16 %v807_v20, %v828_v27  ;;  %v930_v32 = vpack.c.bf16 %v882_v28, %v860_v22  ;;  %v836_v33 = vsel %vm554_vm0, %v819_v30, 0.0  ;;  %v864_v34 = vsel %vm858_vm3, %v847_v43, %v855_v60 }
 0x227   : > { %v872_v35 = vsel %vm858_vm3, %v855_v60, %v847_v43  ;;  %v917_v38 = vpack.c.bf16 %v811_v29, %v836_v33  ;;  %v806_v39 = vsel %vm805_vm2, %v789_v44, %v797_v62  ;;  %v814_v40 = vsel %vm805_vm2, %v797_v62, %v789_v44 }
 0x228   : > { %922 = vst [vmem:[#allocation3 + $0x10] sm:$0xff] %v913_v31  ;;  %939 = vst [vmem:[#allocation4 + $0x10] sm:$0xff] %v930_v32  ;;  %v890_v41 = vsel %vm557_vm1, %v872_v35, 0.0  ;;  %v826_v42 = vsel %vm554_vm0, %v814_v40, 0.0  ;;  %v859_v45 = vsel %vm858_vm3, %v842_v48, %v850_v63  ;;  %v867_v43 = vsel %vm858_vm3, %v850_v63, %v842_v48 }
 0x229   : > { %926 = vst [vmem:[#allocation3 + $0x30] sm:$0xff] %v917_v38  ;;  %v934_v46 = vpack.c.bf16 %v890_v41, %v864_v34  ;;  %v880_v54 = vsel %vm557_vm1, %v867_v43, 0.0  ;;  %v895_v44 = vpack.c.bf16 %v774_v47, %v5460_v36  ;;  %v912_v55 = vpack.c.bf16 %v806_v39, %v826_v42 }
 0x22a   : > { %v929_v56 = vpack.c.bf16 %v880_v54, %v859_v45  ;;  %v801_v57 = vrot.slane %v5474_v51, 7  ;;  %v854_v60 = vrot.slane %v5474_v51, 1  ;;  %v899_v61 = vpack.c.bf16 %v5474_v51, %v5462_v37 }
 0x22b   : > { %943 = vst [vmem:[#allocation4 + $0x30] sm:$0xff] %v934_v46  ;;  %904 = vst [vmem:[#allocation2 + $0x8] sm:$0xff] %v895_v44  ;;  %v735_v48 = vadd.f32 %v3714_v52, %v5449_v18  ;;  %v767_v62 = vadd.f32 %v3722_v53, %v5449_v18  ;;  %v727_v63 = vadd.f32 %v5449_v18, %v726_v58 }
 0x22c   : > { %921 = vst [vmem:[#allocation3 + $0x8] sm:$0xff] %v912_v55  ;;  %v759_v36 = vadd.f32 %v5449_v18, %v758_v59  ;;  %938 = vst [vmem:[#allocation4 + $0x8] sm:$0xff] %v929_v56  ;;  %v810_v47 = vsel %vm805_vm2, %v793_v49, %v801_v57  ;;  %v818_v20 = vsel %vm805_vm2, %v801_v57, %v793_v49 }
 0x22d   : > { %v863_v51 = vsel %vm858_vm3, %v846_v50, %v854_v60  ;;  %v871_v52 = vsel %vm858_vm3, %v854_v60, %v846_v50  ;;  %908 = vst [vmem:[#allocation2 + $0x28] sm:$0xff] %v899_v61  ;;  %v834_v53 = vsel %vm554_vm0, %v818_v20, 0.0  ;;  %v779_v49 = vmax.f32 %v735_v48, 0.0 }
 0x22e   : > { %v888_v58 = vsel %vm557_vm1, %v871_v52, 0.0  ;;  %v916_v59 = vpack.c.bf16 %v810_v47, %v834_v53  ;;  %v787_v22 = vmax.f32 %v767_v62, 0.0  ;;  %v777_v23 = vmax.f32 %v727_v63, 0.0 }
 0x22f   : > { %v933_v21 = vpack.c.bf16 %v888_v58, %v863_v51  ;;  %v5537_v27 = vmax.f32 %v759_v36, 0.0  ;;  %v738_v37 = vadd.f32 %v3715_v16, %v5449_v18  ;;  %v770_v50 = vadd.f32 %v3723_v19, %v5449_v18 }
 0x230   : > { %925 = vst [vmem:[#allocation3 + $0x28] sm:$0xff] %v916_v59  ;;  %v730_v28 = vadd.f32 %v5449_v18, %v729_v24  ;;  %v762_v29 = vadd.f32 %v5449_v18, %v761_v26  ;;  %v792_v30 = vrot.slane %v779_v49, 7  ;;  %v845_v31 = vrot.slane %v779_v49, 1 }
 0x231   : > { %942 = vst [vmem:[#allocation4 + $0x28] sm:$0xff] %v933_v21  ;;  %v796_v32 = vrot.slane %v787_v22, 7  ;;  %v849_v33 = vrot.slane %v787_v22, 1  ;;  %v791_v34 = vrot.slane %v777_v23, 7  ;;  %v780_v35 = vmax.f32 %v738_v37, 0.0 }
 0x232   : > { %v788_v38 = vmax.f32 %v770_v50, 0.0  ;;  %v778_v39 = vmax.f32 %v730_v28, 0.0  ;;  %v844_v40 = vrot.slane %v777_v23, 1  ;;  %v795_v41 = vrot.slane %v5537_v27, 7 }
 0x233   : > { %v848_v42 = vrot.slane %v5537_v27, 1  ;;  %v786_v16 = vmax.f32 %v762_v29, 0.0  ;;  %v800_v45 = vrot.slane %v780_v35, 7  ;;  %v853_v19 = vrot.slane %v780_v35, 1 }
 0x234   : > { %v898_v43 = vpack.c.bf16 %v780_v35, %v779_v49  ;;  %v804_v24 = vrot.slane %v788_v38, 7  ;;  %v857_v46 = vrot.slane %v788_v38, 1  ;;  %v902_v26 = vpack.c.bf16 %v788_v38, %v787_v22 }
 0x235   : > { %v799_v54 = vrot.slane %v778_v39, 7  ;;  %v852_v44 = vrot.slane %v778_v39, 1  ;;  %v809_v55 = vsel %vm805_vm2, %v792_v30, %v800_v45  ;;  %v817_v56 = vsel %vm805_vm2, %v800_v45, %v792_v30 }
 0x236   : > { %v862_v57 = vsel %vm858_vm3, %v845_v31, %v853_v19  ;;  %v870_v60 = vsel %vm858_vm3, %v853_v19, %v845_v31  ;;  %907 = vst [vmem:[#allocation2 + $0x20] sm:$0xff] %v898_v43  ;;  %v832_v61 = vsel %vm554_vm0, %v817_v56, 0.0  ;;  %v813_v62 = vsel %vm805_vm2, %v796_v32, %v804_v24  ;;  %911 = vst [vmem:[#allocation2 + $0x40] sm:$0xff] %v902_v26 }
 0x237   : > { %v886_v48 = vsel %vm557_vm1, %v870_v60, 0.0  ;;  %v821_v63 = vsel %vm805_vm2, %v804_v24, %v796_v32  ;;  %v915_v36 = vpack.c.bf16 %v809_v55, %v832_v61  ;;  %v866_v51 = vsel %vm858_vm3, %v849_v33, %v857_v46 }
 0x238   : > { %v932_v47 = vpack.c.bf16 %v886_v48, %v862_v57  ;;  %v840_v20 = vsel %vm554_vm0, %v821_v63, 0.0  ;;  %v874_v52 = vsel %vm858_vm3, %v857_v46, %v849_v33  ;;  %v808_v58 = vsel %vm805_vm2, %v791_v34, %v799_v54 }
 0x239   : > { %v919_v53 = vpack.c.bf16 %v813_v62, %v840_v20  ;;  %v816_v59 = vsel %vm805_vm2, %v799_v54, %v791_v34  ;;  %924 = vst [vmem:[#allocation3 + $0x20] sm:$0xff] %v915_v36  ;;  %v894_v21 = vsel %vm557_vm1, %v874_v52, 0.0  ;;  %v861_v22 = vsel %vm858_vm3, %v844_v40, %v852_v44 }
 0x23a   : > { %941 = vst [vmem:[#allocation4 + $0x20] sm:$0xff] %v932_v47  ;;  %v830_v49 = vsel %vm554_vm0, %v816_v59, 0.0  ;;  %v869_v37 = vsel %vm858_vm3, %v852_v44, %v844_v40  ;;  %v936_v50 = vpack.c.bf16 %v894_v21, %v866_v51  ;;  %v897_v29 = vpack.c.bf16 %v778_v39, %v777_v23 }
 0x23b   : > { %928 = vst [vmem:[#allocation3 + $0x40] sm:$0xff] %v919_v53  ;;  %v884_v28 = vsel %vm557_vm1, %v869_v37, 0.0  ;;  %v914_v30 = vpack.c.bf16 %v808_v58, %v830_v49  ;;  %v803_v32 = vrot.slane %v786_v16, 7  ;;  %v856_v33 = vrot.slane %v786_v16, 1  ;;  %949 = sbr.rel (%p3322_p12) target bundleno = 832 (0x340), region = 84 }
 0x23c   : > { %v931_v31 = vpack.c.bf16 %v884_v28, %v861_v22  ;;  %v901_v34 = vpack.c.bf16 %v786_v16, %v5537_v27  ;;  %945 = vst [vmem:[#allocation4 + $0x40] sm:$0xff] %v936_v50  ;;  %906 = vst [vmem:[#allocation2 + $0x18] sm:$0xff] %v897_v29 }
 0x23d   : > { %923 = vst [vmem:[#allocation3 + $0x18] sm:$0xff] %v914_v30  ;;  %v812_v35 = vsel %vm805_vm2, %v795_v41, %v803_v32  ;;  %v820_v38 = vsel %vm805_vm2, %v803_v32, %v795_v41  ;;  %v865_v23 = vsel %vm858_vm3, %v848_v42, %v856_v33  ;;  %v873_v39 = vsel %vm858_vm3, %v856_v33, %v848_v42  ;;  %v4429_v42 = vld [vmem:[%s457_s21] sm:$0xff] (!%p3322_p12)  }
 0x23e   : > { %940 = vst [vmem:[#allocation4 + $0x18] sm:$0xff] %v931_v31  ;;  %910 = vst [vmem:[#allocation2 + $0x38] sm:$0xff] %v901_v34  ;;  %v838_v27 = vsel %vm554_vm0, %v820_v38, 0.0  ;;  %v892_v40 = vsel %vm557_vm1, %v873_v39, 0.0  ;;  %v4857_v41 = vmov (!%p3322_p12), 0.0  }
 0x23f   : > { %v918_v16 = vpack.c.bf16 %v812_v35, %v838_v27  ;;  %v935_v45 = vpack.c.bf16 %v892_v40, %v865_v23  ;;  %3724 = vmatprep.subr.bf16.mxu0 (!%p3322_p12), %v4857_v41  ;;  %3740 = vmatprep.mubr.msk.bf16.mxu0 (!%p3322_p12), %vm4858_vm4, %v4857_v41 }
 0x240   : > { %3725 = vmatpush3.bf16.msra.mxu0 (!%p3322_p12), %v5364_v0 }
 0x241   : > { %927 = vst [vmem:[#allocation3 + $0x38] sm:$0xff] %v918_v16  ;;  %944 = vst [vmem:[#allocation4 + $0x38] sm:$0xff] %v935_v45  ;;  %3726 = vmatprep.subr.bf16.mxu0 (!%p3322_p12), %v4857_v41 }
 0x244   : > { %3727 = vmatpush3.bf16.msra.mxu0 %v5366_v1 }
 0x245   : > { %3728 = vmatprep.subr.bf16.mxu0 %v4857_v41 }
 0x248   : > { %3729 = vmatpush3.bf16.msra.mxu0 %v5374_v2 }
 0x249   : > { %3730 = vmatprep.subr.bf16.mxu0 %v4857_v41 }
 0x24c   : > { %3731 = vmatpush3.bf16.msra.mxu0 %v5380_v3 }
 0x24d   : > { %3732 = vmatprep.subr.bf16.mxu0 %v4857_v41 }
 0x250   : > { %3733 = vmatpush3.bf16.msra.mxu0 %v5392_v6 }
 0x251   : > { %3734 = vmatprep.subr.bf16.mxu0 %v4857_v41 }
 0x254   : > { %3735 = vmatpush3.bf16.msra.mxu0 %v5400_v7 }
 0x255   : > { %3736 = vmatprep.subr.bf16.mxu0 %v4857_v41 }
 0x258   : > { %3737 = vmatpush3.bf16.msra.mxu0 %v5406_v8 }
 0x259   : > { %3738 = vmatprep.subr.bf16.mxu0 %v4857_v41 }
 0x25c   : > { %3739 = vmatpush3.bf16.msra.mxu0 %v5412_v9 }
 0x25f   : > { %3741 = vmatmul.mubr.bf16.vlgmr.msra.gmra.mrb[0].mxu0 %v4429_v42 }
 0x332   : > { %v992_v19 = vpop.f32.mrb[0].mxu0 }
 0x333   : > { %v993_v43 = vadd.f32 %v5449_v18, %v992_v19  ;;  %v3742_v24 = vpop.f32.mrb[1].mxu0 }
 0x334   : > { %v995_v46 = vpop.f32.mrb[2].mxu0 }
 0x335   : > { %v999_v26 = vmax.f32 %v993_v43, 0.0  ;;  %v996_v54 = vadd.f32 %v5449_v18, %v995_v46  ;;  %v3743_v44 = vpop.f32.mrb[3].mxu0 }
 0x337   : > { %v1000_v55 = vmax.f32 %v996_v54, 0.0  ;;  %v1001_v56 = vrot.slane %v999_v26, 7  ;;  %v1007_v57 = vrot.slane %v999_v26, 1 }
 0x339   : > { %v1002_v60 = vrot.slane %v1000_v55, 7  ;;  %v1008_v61 = vrot.slane %v1000_v55, 1  ;;  %v1013_v48 = vpack.c.bf16 %v1000_v55, %v999_v26 }
 0x33b   : > { %v1003_v62 = vsel %vm805_vm2, %v1001_v56, %v1002_v60  ;;  %v1004_v63 = vsel %vm805_vm2, %v1002_v60, %v1001_v56  ;;  %v1009_v36 = vsel %vm858_vm3, %v1007_v57, %v1008_v61  ;;  %v1010_v47 = vsel %vm858_vm3, %v1008_v61, %v1007_v57  ;;  %1014 = vst [vmem:[#allocation2] sm:$0xff] %v1013_v48 }
 0x33c   : > { %v1005_v20 = vsel %vm554_vm0, %v1004_v63, 0.0  ;;  %v1012_v51 = vsel %vm557_vm1, %v1010_v47, 0.0 }
 0x33d   : > { %v1015_v52 = vpack.c.bf16 %v1003_v62, %v1005_v20  ;;  %v1017_v53 = vpack.c.bf16 %v1012_v51, %v1009_v36 }
 0x33f   : > { %1016 = vst [vmem:[#allocation3] sm:$0xff] %v1015_v52  ;;  %1018 = vst [vmem:[#allocation4] sm:$0xff] %v1017_v53 }
 0x340 PF: > { %s6035_s25 = sld [smem:[#allocation27_spill]] }
 0x346   : > { %p3324_p4 = scmp.ne.s32.totalorder %s6035_s25, 0 }
 0x347   : > { %v4859_v58 = vmov (!%p3324_p4), 0  }
 0x348   : > { %1022 = sbr.rel (%p3324_p4) target bundleno = 847 (0x34f), region = 88  ;;  %1023 = vst [vmem:[#allocation2] sm:$0xff] (!%p3324_p4), %v4859_v58  ;;  %1024 = vst [vmem:[#allocation3] sm:$0xff] (!%p3324_p4), %v4859_v58 }
 0x349   : > { %1025 = vst [vmem:[#allocation4] sm:$0xff] (!%p3324_p4), %v4859_v58 }
 0x34f PF: > { %s6036_s29 = sld [smem:[#allocation27_spill]] }
 0x355   : > { %p3325_p5 = scmp.ge.s32.totalorder %s6036_s29, 1 }
 0x356   : > { %v4860_v59 = vmov (!%p3325_p5), 0.0   ;;  %vm4861_vm5 = vmmov (!%p3325_p5), 0  }
 0x357   : > { %1029 = sbr.rel (%p3325_p5) target bundleno = 1112 (0x458), region = 92  ;;  %3744 = vmatprep.subr.bf16.mxu0 (!%p3325_p5), %v4860_v59  ;;  %3760 = vmatprep.mubr.msk.bf16.mxu0 (!%p3325_p5), %vm4861_vm5, %v4860_v59 }
 0x358   : > { %3745 = vmatpush3.bf16.msra.mxu0 (!%p3325_p5), %v5364_v0  ;;  %v4430_v0 = vld [vmem:[%s466_s5] sm:$0xff] (!%p3325_p5)  }
 0x359   : > { %3746 = vmatprep.subr.bf16.mxu0 (!%p3325_p5), %v4860_v59 }
 0x35c   : > { %3747 = vmatpush3.bf16.msra.mxu0 (!%p3325_p5), %v5366_v1 }
 0x35d   : > { %3748 = vmatprep.subr.bf16.mxu0 (!%p3325_p5), %v4860_v59 }
 0x360   : > { %3749 = vmatpush3.bf16.msra.mxu0 %v5374_v2 }
 0x361   : > { %3750 = vmatprep.subr.bf16.mxu0 %v4860_v59 }
 0x364   : > { %3751 = vmatpush3.bf16.msra.mxu0 %v5380_v3 }
 0x365   : > { %3752 = vmatprep.subr.bf16.mxu0 %v4860_v59 }
 0x368   : > { %3753 = vmatpush3.bf16.msra.mxu0 %v5392_v6 }
 0x369   : > { %3754 = vmatprep.subr.bf16.mxu0 %v4860_v59 }
 0x36c   : > { %3755 = vmatpush3.bf16.msra.mxu0 %v5400_v7 }
 0x36d   : > { %3756 = vmatprep.subr.bf16.mxu0 %v4860_v59 }
 0x370   : > { %3757 = vmatpush3.bf16.msra.mxu0 %v5406_v8 }
 0x371   : > { %3758 = vmatprep.subr.bf16.mxu0 %v4860_v59 }
 0x374   : > { %3759 = vmatpush3.bf16.msra.mxu0 %v5412_v9 }
 0x377   : > { %3761 = vmatmul.mubr.bf16.vlgmr.msra.gmra.mrb[0].mxu0 %v4430_v0 }
 0x44a   : > { %v1072_v1 = vpop.f32.mrb[0].mxu0 }
 0x44b   : > { %v1073_v2 = vadd.f32 %v5449_v18, %v1072_v1  ;;  %v3762_v21 = vpop.f32.mrb[1].mxu0 }
 0x44c   : > { %v1075_v3 = vpop.f32.mrb[2].mxu0 }
 0x44d   : > { %v1079_v49 = vmax.f32 %v1073_v2, 0.0  ;;  %v1076_v6 = vadd.f32 %v5449_v18, %v1075_v3  ;;  %v3763_v22 = vpop.f32.mrb[3].mxu0 }
 0x44f   : > { %v1080_v37 = vmax.f32 %v1076_v6, 0.0  ;;  %v1081_v7 = vrot.slane %v1079_v49, 7  ;;  %v1087_v50 = vrot.slane %v1079_v49, 1 }
 0x451   : > { %v1082_v28 = vrot.slane %v1080_v37, 7  ;;  %v1088_v8 = vrot.slane %v1080_v37, 1  ;;  %v1093_v29 = vpack.c.bf16 %v1080_v37, %v1079_v49 }
 0x453   : > { %v1083_v30 = vsel %vm805_vm2, %v1081_v7, %v1082_v28  ;;  %v1084_v9 = vsel %vm805_vm2, %v1082_v28, %v1081_v7  ;;  %v1089_v31 = vsel %vm858_vm3, %v1087_v50, %v1088_v8  ;;  %v1090_v32 = vsel %vm858_vm3, %v1088_v8, %v1087_v50  ;;  %1095 = vst [vmem:[#allocation2 + $0x48] sm:$0xff] %v1093_v29 }
 0x454   : > { %v1085_v18 = vsel %vm554_vm0, %v1084_v9, 0.0  ;;  %v1092_v33 = vsel %vm557_vm1, %v1090_v32, 0.0 }
 0x455   : > { %v1096_v34 = vpack.c.bf16 %v1083_v30, %v1085_v18  ;;  %v1099_v35 = vpack.c.bf16 %v1092_v33, %v1089_v31 }
 0x457   : > { %1098 = vst [vmem:[#allocation3 + $0x48] sm:$0xff] %v1096_v34  ;;  %1101 = vst [vmem:[#allocation4 + $0x48] sm:$0xff] %v1099_v35 }
 0x458 PF: > { %s6037_s30 = sld [smem:[#allocation27_spill]] }
 0x45e   : > { %p3327_p10 = scmp.ne.s32.totalorder %s6037_s30, 1 }
 0x45f   : > { %v4862_v38 = vmov (!%p3327_p10), 0  }
 0x460   : > { %1105 = sbr.rel (%p3327_p10) target bundleno = 1127 (0x467), region = 96  ;;  %1107 = vst [vmem:[#allocation2 + $0x48] sm:$0xff] (!%p3327_p10), %v4862_v38  ;;  %1109 = vst [vmem:[#allocation3 + $0x48] sm:$0xff] (!%p3327_p10), %v4862_v38 }
 0x461   : > { %1111 = vst [vmem:[#allocation4 + $0x48] sm:$0xff] (!%p3327_p10), %v4862_v38 }
 0x467 PF: > { %v4431_v23 = vld [vmem:[#allocation13 + $0x40] sm:$0xff]   ;;  %v4433_v17 = vld [vmem:[#allocation13 + $0x48] sm:$0xff]   ;;  %v4435_v27 = vld [vmem:[#allocation13 + $0x50] sm:$0xff]   ;;  %s6038_s0 = sld [smem:[#allocation45_spill]]  ;;  %s6039_s26 = sld [smem:[#allocation47_spill]] }
 0x468   : > { %v4432_v39 = vld [vmem:[#allocation13 + $0x100] sm:$0xff]   ;;  %3764 = vmatprep.subr.bf16.mxu1 %v4431_v23  ;;  %v4434_v25 = vld [vmem:[#allocation13 + $0x108] sm:$0xff]   ;;  %v4436_v40 = vld [vmem:[#allocation13 + $0x110] sm:$0xff]   ;;  %s6040_s6 = sld [smem:[#allocation27_spill]]  ;;  %s6041_s20 = sld [smem:[#allocation28_spill]] }
 0x469   : > { %3892 = vmatprep.subr.bf16.mxu0 %v4432_v39  ;;  %3765 = vmatpush3.bf16.msra.mxu1 %v4431_v23  ;;  %v4437_v16 = vld [vmem:[#allocation13 + $0x58] sm:$0xff]   ;;  %v4439_v41 = vld [vmem:[#allocation13 + $0x60] sm:$0xff]   ;;  %v4441_v19 = vld [vmem:[#allocation13 + $0x68] sm:$0xff]   ;;  %s3100_s5 = sshll.u32 %s5596_s1, 4  ;;  %s6042_s18 = sld [smem:[#allocation48_spill]]  ;;  %s5837_s5 = int_to_ptr.vmem [resolvable:$true] %s3100_s5 }
 0x46a   : > { %3893 = vmatpush3.bf16.msra.mxu0 %v4432_v39  ;;  %3766 = vmatprep.subr.bf16.mxu1 %v4433_v17  ;;  %v4438_v45 = vld [vmem:[#allocation13 + $0x118] sm:$0xff]   ;;  %v4440_v42 = vld [vmem:[#allocation13 + $0x120] sm:$0xff]   ;;  %v1136_v43 = vld [vmem:[#allocation2] sm:$0xff]  ;;  %s3084_s29 = scalar_lea.sflag [#allocation7], %s5327_s4  ;;  %s4685_s30 = scalar_lea.vmem %s5837_s5, 1024 }
 0x46b   : > { %3894 = vmatprep.subr.bf16.mxu0 %v4434_v25  ;;  %v1823_v24 = vld [vmem:[#allocation2 + $0x8] sm:$0xff]  ;;  %v4442_v46 = vld [vmem:[#allocation13 + $0x128] sm:$0xff]   ;;  %3780 = vmatprep.mubr.bf16.mxu1 %v1136_v43  ;;  %v4443_v26 = vld [vmem:[#allocation13 + $0x70] sm:$0xff]   ;;  %p4686_p8 = scmp.ne.s32.totalorder %s5837_s5, %s4685_s30  ;;  %p6044_p2 = scmp.ne.s32.totalorder %s6002_s19, 0 }
 0x46c   : > { %3908 = vmatprep.mubr.bf16.mxu0 %v1823_v24  ;;  %v4444_v54 = vld [vmem:[#allocation13 + $0x130] sm:$0xff]   ;;  %v4445_v44 = vld [vmem:[#allocation13 + $0x78] sm:$0xff]   ;;  %v4447_v56 = vld [vmem:[#allocation13] sm:$0xff]   ;;  %s4863_s28 = smov [#allocation16]  }
 0x46d   : > { %3767 = vmatpush3.bf16.msra.mxu1 %v4433_v17  ;;  %v4446_v55 = vld [vmem:[#allocation13 + $0x138] sm:$0xff]   ;;  %v4448_v57 = vld [vmem:[#allocation13 + $0x140] sm:$0xff]   ;;  %v4449_v61 = vld [vmem:[#allocation13 + $0x8] sm:$0xff]   ;;  %p4687_p9 = pnand %p4686_p8, %p6044_p2  ;;  %s4689_s7 = sshll.u32 %s4863_s28, 4  ;;  %s4690_s7 = int_to_ptr.vmem [resolvable:$false] %s4689_s7 }
 0x46e   : > { %3895 = vmatpush3.bf16.msra.mxu0 %v4434_v25  ;;  %3768 = vmatprep.subr.bf16.mxu1 %v4435_v27  ;;  %v5650_v60 = vld [vmem:[#allocation2 + $0x10] sm:$0xff]  ;;  %v4450_v48 = vld [vmem:[#allocation13 + $0x148] sm:$0xff]   ;;  %v4451_v63 = vld [vmem:[#allocation13 + $0x10] sm:$0xff]   ;;  %s3450_s21 = sshll.u32 %s6040_s6, 4  ;;  %s3429_s11 = sshll.u32 %s6041_s20, 5 }
 0x46f   : > { %3896 = vmatprep.subr.bf16.mxu0 %v4436_v40  ;;  %v5653_v62 = vld [vmem:[#allocation2 + $0x18] sm:$0xff]  ;;  %v4452_v36 = vld [vmem:[#allocation13 + $0x150] sm:$0xff]   ;;  %v4453_v20 = vld [vmem:[#allocation13 + $0x18] sm:$0xff]   ;;  %s3097_s10 = sadd.s32 %s3450_s21, %s3429_s11  ;;  %s6043_s24 = smov %s6042_s18 }
 0x470   : > { %v5657_v47 = vld [vmem:[#allocation2 + $0x20] sm:$0xff]  ;;  %v4454_v51 = vld [vmem:[#allocation13 + $0x158] sm:$0xff]   ;;  %v4455_v53 = vld [vmem:[#allocation13 + $0x20] sm:$0xff]   ;;  %s3430_s9 = sshll.u32 %s3097_s10, 6  ;;  %p4688_p7 = pneg %p4687_p9 }
 0x471   : > { %3769 = vmatpush3.bf16.msra.mxu1 %v4435_v27  ;;  %v5661_v52 = vld [vmem:[#allocation2 + $0x28] sm:$0xff]  ;;  %v4456_v58 = vld [vmem:[#allocation13 + $0x160] sm:$0xff]   ;;  %v4457_v0 = vld [vmem:[#allocation13 + $0x28] sm:$0xff]   ;;  %s5835_s25 = scalar_lea.hbm %s6042_s18, %s3430_s9  ;;  %p4692_p6 = scmp.lt.s32.totalorder %s5837_s5, %s4690_s7 }
 0x472   : > { %3897 = vmatpush3.bf16.msra.mxu0 %v4436_v40  ;;  %3770 = vmatprep.subr.bf16.mxu1 %v4437_v16  ;;  %v5665_v59 = vld [vmem:[#allocation2 + $0x30] sm:$0xff]  ;;  %v4458_v1 = vld [vmem:[#allocation13 + $0x168] sm:$0xff]   ;;  %v4459_v21 = vld [vmem:[#allocation13 + $0x30] sm:$0xff]  }
 0x473   : > { %3898 = vmatprep.subr.bf16.mxu0 %v4438_v45  ;;  %v5669_v2 = vld [vmem:[#allocation2 + $0x38] sm:$0xff]  ;;  %v4460_v3 = vld [vmem:[#allocation13 + $0x170] sm:$0xff]   ;;  %v4461_v6 = vld [vmem:[#allocation13 + $0x38] sm:$0xff]  }
 0x474   : > { %v5673_v49 = vld [vmem:[#allocation2 + $0x40] sm:$0xff]  ;;  %v4462_v22 = vld [vmem:[#allocation13 + $0x178] sm:$0xff]   ;;  %v1112_v37 = vld [vmem:[#allocation3] sm:$0xff] }
 0x475   : > { %3771 = vmatpush3.bf16.msra.mxu1 %v4437_v16  ;;  %v5677_v7 = vld [vmem:[#allocation4 + $0x8] sm:$0xff]  ;;  %v4463_v50 = vld [vmem:[#allocation13 + $0x80] sm:$0xff]   ;;  %v5680_v8 = vld [vmem:[#allocation3 + $0x8] sm:$0xff] }
 0x476   : > { %3899 = vmatpush3.bf16.msra.mxu0 %v4438_v45  ;;  %3772 = vmatprep.subr.bf16.mxu1 %v4439_v41  ;;  %v4464_v28 = vld [vmem:[#allocation13 + $0x180] sm:$0xff]   ;;  %v4465_v30 = vld [vmem:[#allocation13 + $0x88] sm:$0xff]   ;;  %v5685_v31 = vld [vmem:[#allocation3 + $0x10] sm:$0xff] }
 0x477   : > { %3900 = vmatprep.subr.bf16.mxu0 %v4440_v42  ;;  %v5682_v29 = vld [vmem:[#allocation4 + $0x10] sm:$0xff]  ;;  %v4466_v9 = vld [vmem:[#allocation13 + $0x188] sm:$0xff]   ;;  %v4467_v18 = vld [vmem:[#allocation13 + $0x90] sm:$0xff]  }
 0x478   : > { %v5688_v32 = vld [vmem:[#allocation4 + $0x18] sm:$0xff]  ;;  %v4468_v33 = vld [vmem:[#allocation13 + $0x190] sm:$0xff]   ;;  %v5692_v34 = vld [vmem:[#allocation3 + $0x18] sm:$0xff] }
 0x479   : > { %3773 = vmatpush3.bf16.msra.mxu1 %v4439_v41  ;;  %v5694_v35 = vld [vmem:[#allocation4 + $0x20] sm:$0xff]  ;;  %v4469_v38 = vld [vmem:[#allocation13 + $0x98] sm:$0xff]   ;;  %v5697_v39 = vld [vmem:[#allocation3 + $0x20] sm:$0xff] }
 0x47a   : > { %3901 = vmatpush3.bf16.msra.mxu0 %v4440_v42  ;;  %3774 = vmatprep.subr.bf16.mxu1 %v4441_v19  ;;  %v4470_v23 = vld [vmem:[#allocation13 + $0x198] sm:$0xff]   ;;  %v4471_v25 = vld [vmem:[#allocation13 + $0xa0] sm:$0xff]   ;;  %v5704_v40 = vld [vmem:[#allocation3 + $0x28] sm:$0xff] }
 0x47b   : > { %3902 = vmatprep.subr.bf16.mxu0 %v4442_v46  ;;  %v5700_v17 = vld [vmem:[#allocation4 + $0x28] sm:$0xff]  ;;  %v4472_v27 = vld [vmem:[#allocation13 + $0x1a0] sm:$0xff]   ;;  %v4473_v45 = vld [vmem:[#allocation13 + $0xa8] sm:$0xff]  }
 0x47c   : > { %v5706_v16 = vld [vmem:[#allocation4 + $0x30] sm:$0xff]  ;;  %v4474_v41 = vld [vmem:[#allocation13 + $0x1a8] sm:$0xff]   ;;  %v5708_v42 = vld [vmem:[#allocation3 + $0x30] sm:$0xff] }
 0x47d   : > { %3775 = vmatpush3.bf16.msra.mxu1 %v4441_v19  ;;  %v5710_v19 = vld [vmem:[#allocation4 + $0x38] sm:$0xff]  ;;  %v4475_v43 = vld [vmem:[#allocation13 + $0xb0] sm:$0xff]  }
 0x47e   : > { %3903 = vmatpush3.bf16.msra.mxu0 %v4442_v46  ;;  %3776 = vmatprep.subr.bf16.mxu1 %v4443_v26  ;;  %v5716_v46 = vld [vmem:[#allocation3 + $0x38] sm:$0xff] }
 0x47f   : > { %3904 = vmatprep.subr.bf16.mxu0 %v4444_v54 }
 0x481   : > { %3777 = vmatpush3.bf16.msra.mxu1 %v4443_v26  ;;  %v5718_v26 = vld [vmem:[#allocation4 + $0x40] sm:$0xff] }
 0x482   : > { %3905 = vmatpush3.bf16.msra.mxu0 %v4444_v54  ;;  %3778 = vmatprep.subr.bf16.mxu1 %v4445_v44  ;;  %v4477_v54 = vld [vmem:[#allocation13 + $0xb8] sm:$0xff]  }
 0x483   : > { %3906 = vmatprep.subr.bf16.mxu0 %v4446_v55 }
 0x485   : > { %3779 = vmatpush3.bf16.msra.mxu1 %v4445_v44  ;;  %v4478_v44 = vld [vmem:[#allocation13 + $0x1b8] sm:$0xff]  }
 0x486   : > { %3907 = vmatpush3.bf16.msra.mxu0 %v4446_v55  ;;  %3796 = vmatprep.subr.bf16.mxu1 %v4447_v56  ;;  %v1451_v55 = vld [vmem:[#allocation4] sm:$0xff] }
 0x487   : > { %3924 = vmatprep.subr.bf16.mxu0 %v4448_v57 }
 0x488   : > { %3781 = vmatmul.mubr.bf16.vlgmr.msra.gmra.mrb[0].mxu1 %v1823_v24  ;;  %v4476_v24 = vld [vmem:[#allocation13 + $0x1b0] sm:$0xff]  }
 0x489   : > { %3909 = vmatmul.mubr.bf16.vlgmr.msra.gmra.mrb[0].mxu0 %v5650_v60  ;;  %3797 = vmatpush3.bf16.msra.mxu1 %v4447_v56  ;;  %v4479_v56 = vld [vmem:[#allocation13 + $0xc0] sm:$0xff]  }
 0x48a   : > { %3925 = vmatpush3.bf16.msra.mxu0 %v4448_v57  ;;  %3798 = vmatprep.subr.bf16.mxu1 %v4449_v61  ;;  %v4480_v57 = vld [vmem:[#allocation13 + $0x1c0] sm:$0xff]  }
 0x48b   : > { %3926 = vmatprep.subr.bf16.mxu0 %v4450_v48  ;;  %3784 = vmatprep.mubr.bf16.mxu1 %v5650_v60 }
 0x48c   : > { %3912 = vmatprep.mubr.bf16.mxu0 %v5653_v62 }
 0x48d   : > { %3799 = vmatpush3.bf16.msra.mxu1 %v4449_v61  ;;  %v4481_v61 = vld [vmem:[#allocation13 + $0xc8] sm:$0xff]  }
 0x48e   : > { %3927 = vmatpush3.bf16.msra.mxu0 %v4450_v48  ;;  %3800 = vmatprep.subr.bf16.mxu1 %v4451_v63  ;;  %v4482_v48 = vld [vmem:[#allocation13 + $0x1c8] sm:$0xff]  }
 0x48f   : > { %3928 = vmatprep.subr.bf16.mxu0 %v4452_v36 }
 0x490   : > { %3785 = vmatmul.mubr.bf16.gmra.mrb[4].mxu1 %v5653_v62 }
 0x491   : > { %3913 = vmatmul.mubr.bf16.gmra.mrb[4].mxu0 %v5657_v47  ;;  %3801 = vmatpush3.bf16.msra.mxu1 %v4451_v63  ;;  %v4483_v63 = vld [vmem:[#allocation13 + $0xd0] sm:$0xff]  }
 0x492   : > { %3929 = vmatpush3.bf16.msra.mxu0 %v4452_v36  ;;  %3802 = vmatprep.subr.bf16.mxu1 %v4453_v20  ;;  %v4484_v36 = vld [vmem:[#allocation13 + $0x1d0] sm:$0xff]  }
 0x493   : > { %3930 = vmatprep.subr.bf16.mxu0 %v4454_v51  ;;  %3788 = vmatprep.mubr.bf16.mxu1 %v5657_v47 }
 0x494   : > { %3916 = vmatprep.mubr.bf16.mxu0 %v5661_v52 }
 0x495   : > { %3803 = vmatpush3.bf16.msra.mxu1 %v4453_v20  ;;  %v4485_v20 = vld [vmem:[#allocation13 + $0xd8] sm:$0xff]  }
 0x496   : > { %3931 = vmatpush3.bf16.msra.mxu0 %v4454_v51  ;;  %3804 = vmatprep.subr.bf16.mxu1 %v4455_v53  ;;  %v4486_v51 = vld [vmem:[#allocation13 + $0x1d8] sm:$0xff]  }
 0x497   : > { %3932 = vmatprep.subr.bf16.mxu0 %v4456_v58 }
 0x498   : > { %3789 = vmatmul.mubr.bf16.gmra.mrb[8].mxu1 %v5661_v52 }
 0x499   : > { %3917 = vmatmul.mubr.bf16.gmra.mrb[8].mxu0 %v5665_v59  ;;  %3805 = vmatpush3.bf16.msra.mxu1 %v4455_v53  ;;  %v4487_v53 = vld [vmem:[#allocation13 + $0xe0] sm:$0xff]  }
 0x49a   : > { %3933 = vmatpush3.bf16.msra.mxu0 %v4456_v58  ;;  %3806 = vmatprep.subr.bf16.mxu1 %v4457_v0  ;;  %v4488_v58 = vld [vmem:[#allocation13 + $0x1e0] sm:$0xff]  }
 0x49b   : > { %3934 = vmatprep.subr.bf16.mxu0 %v4458_v1  ;;  %3792 = vmatprep.mubr.bf16.mxu1 %v5665_v59 }
 0x49c   : > { %3920 = vmatprep.mubr.bf16.mxu0 %v5669_v2 }
 0x49d   : > { %3807 = vmatpush3.bf16.msra.mxu1 %v4457_v0  ;;  %v4489_v0 = vld [vmem:[#allocation13 + $0xe8] sm:$0xff]  }
 0x49e   : > { %3935 = vmatpush3.bf16.msra.mxu0 %v4458_v1  ;;  %3808 = vmatprep.subr.bf16.mxu1 %v4459_v21  ;;  %v4490_v1 = vld [vmem:[#allocation13 + $0x1e8] sm:$0xff]  }
 0x49f   : > { %3936 = vmatprep.subr.bf16.mxu0 %v4460_v3 }
 0x4a0   : > { %3793 = vmatmul.mubr.bf16.gmra.mrb[12].mxu1 %v5669_v2 }
 0x4a1   : > { %3921 = vmatmul.mubr.bf16.gmra.mrb[12].mxu0 %v5673_v49  ;;  %3809 = vmatpush3.bf16.msra.mxu1 %v4459_v21  ;;  %v2202_v21 = vld [vmem:[#allocation3 + $0x40] sm:$0xff] }
 0x4a2   : > { %3937 = vmatpush3.bf16.msra.mxu0 %v4460_v3  ;;  %3810 = vmatprep.subr.bf16.mxu1 %v4461_v6  ;;  %v4491_v3 = vld [vmem:[#allocation13 + $0xf0] sm:$0xff]  }
 0x4a3   : > { %3938 = vmatprep.subr.bf16.mxu0 %v4462_v22  ;;  %3812 = vmatprep.mubr.bf16.mxu1 %v1112_v37  ;;  %v4493_v37 = vld [vmem:[#allocation13 + $0xf8] sm:$0xff]  }
 0x4a4   : > { %3940 = vmatprep.mubr.bf16.mxu0 %v5677_v7 }
 0x4a5   : > { %3811 = vmatpush3.bf16.msra.mxu1 %v4461_v6  ;;  %v4492_v6 = vld [vmem:[#allocation13 + $0x1f0] sm:$0xff]  }
 0x4a6   : > { %3939 = vmatpush3.bf16.msra.mxu0 %v4462_v22  ;;  %3828 = vmatprep.subr.bf16.mxu1 %v4463_v50  ;;  %v2203_v22 = vld [vmem:[#allocation3 + $0x48] sm:$0xff] }
 0x4a7   : > { %3956 = vmatprep.subr.bf16.mxu0 %v4464_v28 }
 0x4a8   : > { %3813 = vmatmul.mubr.bf16.vlgmr.msra.gmra.mrb[0].mxu1 %v5680_v8 }
 0x4a9   : > { %3941 = vmatmul.mubr.bf16.vlgmr.msra.gmra.mrb[0].mxu0 %v5682_v29  ;;  %3829 = vmatpush3.bf16.msra.mxu1 %v4463_v50  ;;  %v4495_v50 = vld [vmem:[#allocation13 + $0x200] sm:$0xff]  }
 0x4aa   : > { %3957 = vmatpush3.bf16.msra.mxu0 %v4464_v28  ;;  %3830 = vmatprep.subr.bf16.mxu1 %v4465_v30  ;;  %v4496_v28 = vld [vmem:[#allocation13 + $0x208] sm:$0xff]  }
 0x4ab   : > { %3958 = vmatprep.subr.bf16.mxu0 %v4466_v9  ;;  %3816 = vmatprep.mubr.bf16.mxu1 %v5685_v31 }
 0x4ac   : > { %3944 = vmatprep.mubr.bf16.mxu0 %v5688_v32 }
 0x4ad   : > { %3831 = vmatpush3.bf16.msra.mxu1 %v4465_v30  ;;  %v4497_v30 = vld [vmem:[#allocation13 + $0x210] sm:$0xff]  }
 0x4ae   : > { %3959 = vmatpush3.bf16.msra.mxu0 %v4466_v9  ;;  %3832 = vmatprep.subr.bf16.mxu1 %v4467_v18  ;;  %v4505_v9 = vld [vmem:[#allocation14 + $0x10] sm:$0xff]  }
 0x4af   : > { %3960 = vmatprep.subr.bf16.mxu0 %v4468_v33 }
 0x4b0   : > { %3817 = vmatmul.mubr.bf16.gmra.mrb[4].mxu1 %v5692_v34 }
 0x4b1   : > { %3945 = vmatmul.mubr.bf16.gmra.mrb[4].mxu0 %v5694_v35  ;;  %3833 = vmatpush3.bf16.msra.mxu1 %v4467_v18  ;;  %v4508_v18 = vld [vmem:[#allocation14 + $0x28] sm:$0xff]  }
 0x4b2   : > { %3961 = vmatpush3.bf16.msra.mxu0 %v4468_v33  ;;  %3834 = vmatprep.subr.bf16.mxu1 %v4469_v38  ;;  %v4509_v33 = vld [vmem:[#allocation14 + $0x30] sm:$0xff]  }
 0x4b3   : > { %3962 = vmatprep.subr.bf16.mxu0 %v4470_v23  ;;  %3820 = vmatprep.mubr.bf16.mxu1 %v5697_v39 }
 0x4b4   : > { %3948 = vmatprep.mubr.bf16.mxu0 %v5700_v17 }
 0x4b5   : > { %3835 = vmatpush3.bf16.msra.mxu1 %v4469_v38 }
 0x4b6   : > { %3963 = vmatpush3.bf16.msra.mxu0 %v4470_v23  ;;  %3836 = vmatprep.subr.bf16.mxu1 %v4471_v25 }
 0x4b7   : > { %3964 = vmatprep.subr.bf16.mxu0 %v4472_v27 }
 0x4b8   : > { %3821 = vmatmul.mubr.bf16.gmra.mrb[8].mxu1 %v5704_v40 }
 0x4b9   : > { %3949 = vmatmul.mubr.bf16.gmra.mrb[8].mxu0 %v5706_v16  ;;  %3837 = vmatpush3.bf16.msra.mxu1 %v4471_v25 }
 0x4ba   : > { %3965 = vmatpush3.bf16.msra.mxu0 %v4472_v27  ;;  %3838 = vmatprep.subr.bf16.mxu1 %v4473_v45 }
 0x4bb   : > { %3966 = vmatprep.subr.bf16.mxu0 %v4474_v41  ;;  %3824 = vmatprep.mubr.bf16.mxu1 %v5708_v42 }
 0x4bc   : > { %3952 = vmatprep.mubr.bf16.mxu0 %v5710_v19 }
 0x4bd   : > { %3839 = vmatpush3.bf16.msra.mxu1 %v4473_v45 }
 0x4be   : > { %3967 = vmatpush3.bf16.msra.mxu0 %v4474_v41  ;;  %3840 = vmatprep.subr.bf16.mxu1 %v4475_v43 }
 0x4bf   : > { %3968 = vmatprep.subr.bf16.mxu0 %v4476_v24 }
 0x4c0   : > { %3825 = vmatmul.mubr.bf16.gmra.mrb[12].mxu1 %v5716_v46 }
 0x4c1   : > { %3953 = vmatmul.mubr.bf16.gmra.mrb[12].mxu0 %v5718_v26  ;;  %3841 = vmatpush3.bf16.msra.mxu1 %v4475_v43 }
 0x4c2   : > { %3969 = vmatpush3.bf16.msra.mxu0 %v4476_v24  ;;  %3842 = vmatprep.subr.bf16.mxu1 %v4477_v54 }
 0x4c3   : > { %3970 = vmatprep.subr.bf16.mxu0 %v4478_v44  ;;  %3844 = vmatprep.mubr.bf16.mxu1 %v1451_v55 }
 0x4c4   : > { %3972 = vmatprep.mubr.bf16.mxu0 %v5685_v31 }
 0x4c5   : > { %3843 = vmatpush3.bf16.msra.mxu1 %v4477_v54  ;;  %v5765_v54 = vld [vmem:[%s6038_s0] ss:$0 sm:$0xff]  ;;  %s4691_s0 = scalar_lea.vmem %s4690_s7, 2048 }
 0x4c6   : > { %3971 = vmatpush3.bf16.msra.mxu0 %v4478_v44  ;;  %3860 = vmatprep.subr.bf16.mxu1 %v4479_v56  ;;  %p4693_p13 = scmp.lt.s32.totalorder %s4691_s0, %s4685_s30 }
 0x4c7   : > { %3988 = vmatprep.subr.bf16.mxu0 %v4480_v57 }
 0x4c8   : > { %3845 = vmatmul.mubr.bf16.vlgmr.msra.gmra.mrb[0].mxu1 %v5677_v7  ;;  %v4494_v7 = vld [vmem:[#allocation13 + $0x1f8] sm:$0xff]   ;;  %p4694_p11 = por %p4693_p13, %p4692_p6 }
 0x4c9   : > { %3973 = vmatmul.mubr.bf16.vlgmr.msra.gmra.mrb[0].mxu0 %v5692_v34  ;;  %3861 = vmatpush3.bf16.msra.mxu1 %v4479_v56 }
 0x4ca   : > { %3989 = vmatpush3.bf16.msra.mxu0 %v4480_v57  ;;  %3862 = vmatprep.subr.bf16.mxu1 %v4481_v61  ;;  %p4695_p0 = pnand %p4694_p11, %p4688_p7 }
 0x4cb   : > { %3990 = vmatprep.subr.bf16.mxu0 %v4482_v48  ;;  %3848 = vmatprep.mubr.bf16.mxu1 %v5682_v29 }
 0x4cc   : > { %3976 = vmatprep.mubr.bf16.mxu0 %v5697_v39 }
 0x4cd   : > { %3863 = vmatpush3.bf16.msra.mxu1 %v4481_v61 }
 0x4ce   : > { %3991 = vmatpush3.bf16.msra.mxu0 %v4482_v48  ;;  %3864 = vmatprep.subr.bf16.mxu1 %v4483_v63 }
 0x4cf   : > { %3992 = vmatprep.subr.bf16.mxu0 %v4484_v36 }
 0x4d0   : > { %3849 = vmatmul.mubr.bf16.gmra.mrb[4].mxu1 %v5688_v32 }
 0x4d1   : > { %3977 = vmatmul.mubr.bf16.gmra.mrb[4].mxu0 %v5704_v40  ;;  %3865 = vmatpush3.bf16.msra.mxu1 %v4483_v63 }
 0x4d2   : > { %3993 = vmatpush3.bf16.msra.mxu0 %v4484_v36  ;;  %3866 = vmatprep.subr.bf16.mxu1 %v4485_v20 }
 0x4d3   : > { %3994 = vmatprep.subr.bf16.mxu0 %v4486_v51  ;;  %3852 = vmatprep.mubr.bf16.mxu1 %v5694_v35 }
 0x4d4   : > { %3980 = vmatprep.mubr.bf16.mxu0 %v5708_v42 }
 0x4d5   : > { %3867 = vmatpush3.bf16.msra.mxu1 %v4485_v20 }
 0x4d6   : > { %3995 = vmatpush3.bf16.msra.mxu0 %v4486_v51  ;;  %3868 = vmatprep.subr.bf16.mxu1 %v4487_v53 }
 0x4d7   : > { %3996 = vmatprep.subr.bf16.mxu0 %v4488_v58 }
 0x4d8   : > { %3853 = vmatmul.mubr.bf16.gmra.mrb[8].mxu1 %v5700_v17 }
 0x4d9   : > { %3981 = vmatmul.mubr.bf16.gmra.mrb[8].mxu0 %v5716_v46  ;;  %3869 = vmatpush3.bf16.msra.mxu1 %v4487_v53 }
 0x4da   : > { %3997 = vmatpush3.bf16.msra.mxu0 %v4488_v58  ;;  %3870 = vmatprep.subr.bf16.mxu1 %v4489_v0 }
 0x4db   : > { %3998 = vmatprep.subr.bf16.mxu0 %v4490_v1  ;;  %3856 = vmatprep.mubr.bf16.mxu1 %v5706_v16 }
 0x4dc   : > { %3984 = vmatprep.mubr.bf16.mxu0 %v2202_v21 }
 0x4dd   : > { %3871 = vmatpush3.bf16.msra.mxu1 %v4489_v0 }
 0x4de   : > { %3999 = vmatpush3.bf16.msra.mxu0 %v4490_v1  ;;  %3872 = vmatprep.subr.bf16.mxu1 %v4491_v3 }
 0x4df   : > { %4000 = vmatprep.subr.bf16.mxu0 %v4492_v6 }
 0x4e0   : > { %3857 = vmatmul.mubr.bf16.gmra.mrb[12].mxu1 %v5710_v19 }
 0x4e1   : > { %3985 = vmatmul.mubr.bf16.gmra.mrb[12].mxu0 %v2203_v22  ;;  %3873 = vmatpush3.bf16.msra.mxu1 %v4491_v3 }
 0x4e2   : > { %4001 = vmatpush3.bf16.msra.mxu0 %v4492_v6  ;;  %3874 = vmatprep.subr.bf16.mxu1 %v4493_v37 }
 0x4e3   : > { %4002 = vmatprep.subr.bf16.mxu0 %v4494_v7  ;;  %3876 = vmatprep.mubr.bf16.mxu1 %v5680_v8  ;;  %v4498_v8 = vld [vmem:[#allocation13 + $0x218] sm:$0xff]  }
 0x4e4   : > { %4004 = vmatprep.mubr.bf16.mxu0 %v5650_v60  ;;  %v4499_v60 = vld [vmem:[#allocation13 + $0x220] sm:$0xff]  }
 0x4e5   : > { %3875 = vmatpush3.bf16.msra.mxu1 %v4493_v37 }
 0x4e6   : > { %4003 = vmatpush3.bf16.msra.mxu0 %v4494_v7 }
 0x4e7   : > { %4020 = vmatprep.subr.bf16.mxu0 %v4495_v50 }
 0x4e8   : > { %3877 = vmatmul.mubr.bf16.vlgmr.msra.gmra.mrb[0].mxu1 %v5685_v31  ;;  %v4506_v31 = vld [vmem:[#allocation14 + $0x18] sm:$0xff]  }
 0x4e9   : > { %4005 = vmatmul.mubr.bf16.vlgmr.msra.gmra.mrb[0].mxu0 %v5653_v62  ;;  %3880 = vmatprep.mubr.bf16.mxu1 %v5692_v34  ;;  %v4500_v62 = vld [vmem:[#allocation13 + $0x228] sm:$0xff]   ;;  %v4510_v34 = vld [vmem:[#allocation14 + $0x38] sm:$0xff]  }
 0x4ea   : > { %4021 = vmatpush3.bf16.msra.mxu0 %v4495_v50  ;;  %4008 = vmatprep.mubr.bf16.mxu0 %v5657_v47  ;;  %v4501_v47 = vld [vmem:[#allocation13 + $0x230] sm:$0xff]  }
 0x4eb   : > { %4022 = vmatprep.subr.bf16.mxu0 %v4496_v28 }
 0x4ee   : > { %4023 = vmatpush3.bf16.msra.mxu0 %v4496_v28 }
 0x4ef   : > { %4024 = vmatprep.subr.bf16.mxu0 %v4497_v30 }
 0x4f0   : > { %3881 = vmatmul.mubr.bf16.gmra.mrb[4].mxu1 %v5697_v39 }
 0x4f1   : > { %4009 = vmatmul.mubr.bf16.gmra.mrb[4].mxu0 %v5661_v52  ;;  %3884 = vmatprep.mubr.bf16.mxu1 %v5704_v40  ;;  %v2390_v52 = vld [vmem:[#allocation2 + $0x48] sm:$0xff] }
 0x4f2   : > { %4025 = vmatpush3.bf16.msra.mxu0 %v4497_v30  ;;  %4012 = vmatprep.mubr.bf16.mxu0 %v5665_v59  ;;  %v4502_v59 = vld [vmem:[#allocation13 + $0x238] sm:$0xff]  }
 0x4f3   : > { %4026 = vmatprep.subr.bf16.mxu0 %v4498_v8 }
 0x4f6   : > { %4027 = vmatpush3.bf16.msra.mxu0 %v4498_v8 }
 0x4f7   : > { %4028 = vmatprep.subr.bf16.mxu0 %v4499_v60 }
 0x4f8   : > { %3885 = vmatmul.mubr.bf16.gmra.mrb[8].mxu1 %v5708_v42 }
 0x4f9   : > { %4013 = vmatmul.mubr.bf16.gmra.mrb[8].mxu0 %v5669_v2  ;;  %3888 = vmatprep.mubr.bf16.mxu1 %v5716_v46  ;;  %v2577_v2 = vld [vmem:[#allocation4 + $0x48] sm:$0xff] }
 0x4fa   : > { %4029 = vmatpush3.bf16.msra.mxu0 %v4499_v60  ;;  %4016 = vmatprep.mubr.bf16.mxu0 %v5673_v49  ;;  %v4503_v49 = vld [vmem:[#allocation14] sm:$0xff]  }
 0x4fb   : > { %4030 = vmatprep.subr.bf16.mxu0 %v4500_v62  ;;  %4052 = vmatprep.subr.bf16.mxu1 %v4503_v49 }
 0x4fc   : > { %4053 = vmatpush3.bf16.msra.mxu1 %v4503_v49 }
 0x4fe   : > { %4031 = vmatpush3.bf16.msra.mxu0 %v4500_v62 }
 0x4ff   : > { %4032 = vmatprep.subr.bf16.mxu0 %v4501_v47 }
 0x500   : > { %3889 = vmatmul.mubr.bf16.gmra.mrb[12].mxu1 %v2202_v21 }
 0x501   : > { %4017 = vmatmul.mubr.bf16.gmra.mrb[12].mxu0 %v2390_v52 }
 0x502   : > { %4033 = vmatpush3.bf16.msra.mxu0 %v4501_v47  ;;  %4036 = vmatprep.mubr.bf16.mxu0 %v5682_v29  ;;  %v4504_v29 = vld [vmem:[#allocation14 + $0x8] sm:$0xff]  }
 0x503   : > { %4034 = vmatprep.subr.bf16.mxu0 %v4502_v59  ;;  %4054 = vmatprep.subr.bf16.mxu1 %v4504_v29 }
 0x504   : > { %4055 = vmatpush3.bf16.msra.mxu1 %v4504_v29 }
 0x505   : > { %4056 = vmatprep.subr.bf16.mxu1 %v4505_v9 }
 0x506   : > { %4035 = vmatpush3.bf16.msra.mxu0 %v4502_v59 }
 0x508   : > { %4057 = vmatpush3.bf16.msra.mxu1 %v4505_v9 }
 0x509   : > { %4037 = vmatmul.mubr.bf16.vlgmr.msra.gmra.mrb[0].mxu0 %v5688_v32  ;;  %4058 = vmatprep.subr.bf16.mxu1 %v4506_v31  ;;  %v4507_v32 = vld [vmem:[#allocation14 + $0x20] sm:$0xff]  }
 0x50a   : > { %4040 = vmatprep.mubr.bf16.mxu0 %v5694_v35 }
 0x50c   : > { %4059 = vmatpush3.bf16.msra.mxu1 %v4506_v31 }
 0x50d   : > { %4060 = vmatprep.subr.bf16.mxu1 %v4507_v32 }
 0x510   : > { %4061 = vmatpush3.bf16.msra.mxu1 %v4507_v32 }
 0x511   : > { %4041 = vmatmul.mubr.bf16.gmra.mrb[4].mxu0 %v5700_v17  ;;  %4062 = vmatprep.subr.bf16.mxu1 %v4508_v18 }
 0x512   : > { %4044 = vmatprep.mubr.bf16.mxu0 %v5706_v16 }
 0x514   : > { %4063 = vmatpush3.bf16.msra.mxu1 %v4508_v18 }
 0x515   : > { %4064 = vmatprep.subr.bf16.mxu1 %v4509_v33 }
 0x518   : > { %4065 = vmatpush3.bf16.msra.mxu1 %v4509_v33 }
 0x519   : > { %4045 = vmatmul.mubr.bf16.gmra.mrb[8].mxu0 %v5710_v19  ;;  %4066 = vmatprep.subr.bf16.mxu1 %v4510_v34 }
 0x51a   : > { %4048 = vmatprep.mubr.bf16.mxu0 %v5718_v26 }
 0x51c   : > { %4067 = vmatpush3.bf16.msra.mxu1 %v4510_v34 }
 0x521   : > { %4049 = vmatmul.mubr.bf16.gmra.mrb[12].mxu0 %v2577_v2 }
 0x5bb   : > { %v3878_v35 = vpop.f32.mrb[0].mxu1 }
 0x5bc   : > { %v1744_v38 = vpop.f32.mrb[1].mxu1 }
 0x5bd   : > { %v3879_v23 = vpop.f32.mrb[2].mxu1 }
 0x5be   : > { %v1747_v39 = vpop.f32.mrb[3].mxu1 }
 0x5c3   : > { %v3882_v17 = vpop.f32.mrb[4].mxu1 }
 0x5c4   : > { %v1760_v25 = vpop.f32.mrb[5].mxu1 }
 0x5c5   : > { %v3883_v27 = vpop.f32.mrb[6].mxu1 }
 0x5c6   : > { %v1763_v40 = vpop.f32.mrb[7].mxu1 }
 0x5cb   : > { %v3886_v16 = vpop.f32.mrb[8].mxu1 }
 0x5cc   : > { %v1776_v45 = vpop.f32.mrb[9].mxu1 }
 0x5cd   : > { %v3887_v41 = vpop.f32.mrb[10].mxu1 }
 0x5ce   : > { %v1779_v42 = vpop.f32.mrb[11].mxu1 }
 0x5d3   : > { %v3890_v19 = vpop.f32.mrb[12].mxu1 }
 0x5d4   : > { %v5756_v43 = vpop.f32.mrb[13].mxu1 }
 0x5d5   : > { %v5758_v24 = vpop.f32.mrb[14].mxu1 }
 0x5d6   : > { %v5760_v46 = vpop.f32.mrb[15].mxu1 }
 0x5dc   : > { %v4038_v26 = vpop.f32.mrb[0].mxu0 }
 0x5dd   : > { %v4100_v44 = vadd.f32 %v4038_v26, %v3878_v35  ;;  %v2677_v55 = vpop.f32.mrb[1].mxu0 }
 0x5de   : > { %v4101_v56 = vadd.f32 %v2677_v55, %v1744_v38  ;;  %v4039_v57 = vpop.f32.mrb[2].mxu0 }
 0x5df   : > { %v2765_v61 = vadd.f32 %v4100_v44, %v5765_v54  ;;  %v4102_v48 = vadd.f32 %v4039_v57, %v3879_v23  ;;  %v2680_v63 = vpop.f32.mrb[3].mxu0 }
 0x5e0   : > { %v2763_v36 = vadd.f32 %v4101_v56, %v5765_v54  ;;  %v4103_v20 = vadd.f32 %v2680_v63, %v1747_v39 }
 0x5e1   : > { %v2766_v51 = vadd.f32 %v4102_v48, %v5765_v54  ;;  %v2781_v58 = vmax.f32 %v2765_v61, 0.0 }
 0x5e2   : > { %v2764_v53 = vadd.f32 %v4103_v20, %v5765_v54  ;;  %v2779_v1 = vmax.f32 %v2763_v36, 0.0 }
 0x5e3   : > { %v2782_v0 = vmax.f32 %v2766_v51, 0.0 }
 0x5e4   : > { %v2780_v21 = vmax.f32 %v2764_v53, 0.0  ;;  %v4042_v3 = vpop.f32.mrb[4].mxu0 }
 0x5e5   : > { %v2796_v6 = vpack.c.bf16 %v2782_v0, %v2781_v58  ;;  %v4104_v22 = vadd.f32 %v4042_v3, %v3882_v17  ;;  %v2693_v37 = vpop.f32.mrb[5].mxu0 }
 0x5e6   : > { %v4105_v7 = vadd.f32 %v2693_v37, %v1760_v25  ;;  %v4043_v50 = vpop.f32.mrb[6].mxu0  ;;  %v2795_v28 = vpack.c.bf16 %v2780_v21, %v2779_v1 }
 0x5e7   : > { %v2769_v30 = vadd.f32 %v4104_v22, %v5765_v54  ;;  %v4106_v8 = vadd.f32 %v4043_v50, %v3883_v27  ;;  %v2696_v60 = vpop.f32.mrb[7].mxu0 }
 0x5e8   : > { %v2767_v62 = vadd.f32 %v4105_v7, %v5765_v54  ;;  %v4107_v47 = vadd.f32 %v2696_v60, %v1763_v40  ;;  %4068 = vmatprep.mubr.bf16.mxu1 %v2795_v28  ;;  %v2973_v7 = vunpack.c.l.bf16 %v5417_v10  ;;  %v2972_v60 = vunpack.c.h.bf16 %v5383_v4 }
 0x5e9   : > { %v2770_v52 = vadd.f32 %v4106_v8, %v5765_v54  ;;  %4069 = vmatmul.mubr.bf16.vlgmr.msra.gmra.mrb[16].mxu1 %v2796_v6  ;;  %v2785_v2 = vmax.f32 %v2769_v30, 0.0  ;;  %v2971_v30 = vunpack.c.l.bf16 %v5383_v4  ;;  %v2978_v4 = vunpack.c.h.bf16 %v5437_v14 }
 0x5ea   : > { %v2768_v59 = vadd.f32 %v4107_v47, %v5765_v54  ;;  %v2783_v29 = vmax.f32 %v2767_v62, 0.0 }
 0x5eb   : > { %v2786_v49 = vmax.f32 %v2770_v52, 0.0 }
 0x5ec   : > { %v2784_v9 = vmax.f32 %v2768_v59, 0.0  ;;  %v4046_v31 = vpop.f32.mrb[8].mxu0 }
 0x5ed   : > { %v4108_v32 = vadd.f32 %v4046_v31, %v3886_v16  ;;  %v2709_v18 = vpop.f32.mrb[9].mxu0  ;;  %v2798_v33 = vpack.c.bf16 %v2786_v49, %v2785_v2 }
 0x5ee   : > { %v4109_v34 = vadd.f32 %v2709_v18, %v1776_v45  ;;  %v4047_v35 = vpop.f32.mrb[10].mxu0  ;;  %v2797_v38 = vpack.c.bf16 %v2784_v9, %v2783_v29  ;;  %v2977_v18 = vunpack.c.l.bf16 %v5437_v14 }
 0x5ef   : > { %v2773_v23 = vadd.f32 %v4108_v32, %v5765_v54  ;;  %v4110_v39 = vadd.f32 %v4047_v35, %v3887_v41  ;;  %v2712_v17 = vpop.f32.mrb[11].mxu0  ;;  %v2975_v35 = vunpack.c.l.bf16 %v5425_v12 }
 0x5f0   : > { %v2771_v25 = vadd.f32 %v4109_v34, %v5765_v54  ;;  %v4111_v27 = vadd.f32 %v2712_v17, %v1779_v42  ;;  %4072 = vmatprep.mubr.bf16.mxu1 %v2797_v38 }
 0x5f1   : > { %v2774_v40 = vadd.f32 %v4110_v39, %v5765_v54  ;;  %4073 = vmatmul.mubr.bf16.gmra.mrb[20].mxu1 %v2798_v33  ;;  %v2789_v44 = vmax.f32 %v2773_v23, 0.0  ;;  %v2976_v23 = vunpack.c.h.bf16 %v5425_v12 }
 0x5f2   : > { %v2772_v26 = vadd.f32 %v4111_v27, %v5765_v54  ;;  %v2787_v55 = vmax.f32 %v2771_v25, 0.0 }
 0x5f3   : > { %v2790_v16 = vmax.f32 %v2774_v40, 0.0 }
 0x5f4   : > { %v2788_v56 = vmax.f32 %v2772_v26, 0.0  ;;  %v4050_v45 = vpop.f32.mrb[12].mxu0 }
 0x5f5   : > { %v4112_v57 = vadd.f32 %v4050_v45, %v3890_v19  ;;  %v2725_v61 = vpop.f32.mrb[13].mxu0  ;;  %v2800_v48 = vpack.c.bf16 %v2790_v16, %v2789_v44  ;;  %v2981_v45 = vunpack.c.l.bf16 %v5420_v11 }
 0x5f6   : > { %v4113_v41 = vadd.f32 %v2725_v61, %v5756_v43  ;;  %v4051_v63 = vpop.f32.mrb[14].mxu0  ;;  %v2799_v36 = vpack.c.bf16 %v2788_v56, %v2787_v55 }
 0x5f7   : > { %v2777_v42 = vadd.f32 %v4112_v57, %v5765_v54  ;;  %v4114_v20 = vadd.f32 %v4051_v63, %v5758_v24  ;;  %v2728_v51 = vpop.f32.mrb[15].mxu0  ;;  %v5789_v24 = vld [vmem:[%s6039_s26] ss:$0 sm:$0xff]  ;;  %v2982_v57 = vunpack.c.h.bf16 %v5420_v11  ;;  %v2980_v63 = vunpack.c.h.bf16 %v5386_v5 }
 0x5f8   : > { %v2775_v53 = vadd.f32 %v4113_v41, %v5765_v54  ;;  %v4115_v58 = vadd.f32 %v2728_v51, %v5760_v46  ;;  %4076 = vmatprep.mubr.bf16.mxu1 %v2799_v36 }
 0x5f9   : > { %v2778_v0 = vadd.f32 %v4114_v20, %v5765_v54  ;;  %4077 = vmatmul.mubr.bf16.gmra.mrb[24].mxu1 %v2800_v48  ;;  %v2793_v1 = vmax.f32 %v2777_v42, 0.0  ;;  %v2979_v48 = vunpack.c.l.bf16 %v5386_v5  ;;  %v2985_v5 = vunpack.c.l.bf16 %v5440_v15 }
 0x5fa   : > { %v2776_v19 = vadd.f32 %v4115_v58, %v5765_v54  ;;  %v2791_v43 = vmax.f32 %v2775_v53, 0.0  ;;  %v2974_v54 = vunpack.c.h.bf16 %v5417_v10 }
 0x5fb   : > { %v2794_v21 = vmax.f32 %v2778_v0, 0.0 }
 0x5fc   : > { %v2792_v3 = vmax.f32 %v2776_v19, 0.0 }
 0x5fd   : > { %v2802_v6 = vpack.c.bf16 %v2794_v21, %v2793_v1 }
 0x5fe   : > { %v2801_v22 = vpack.c.bf16 %v2792_v3, %v2791_v43  ;;  %v2986_v3 = vunpack.c.h.bf16 %v5440_v15 }
 0x600   : > { %4080 = vmatprep.mubr.bf16.mxu1 %v2801_v22  ;;  %v2983_v22 = vunpack.c.l.bf16 %v5428_v13 }
 0x601   : > { %4081 = vmatmul.mubr.bf16.gmra.mrb[28].mxu1 %v2802_v6 }
 0x6bc   : > { %v4070_v46 = vpop.f32.mrb[16].mxu1 }
 0x6bd   : > { %v2917_v37 = vadd.f32 %v4070_v46, %v5789_v24  ;;  %v2908_v50 = vpop.f32.mrb[17].mxu1 }
 0x6be   : > { %v2909_v28 = vadd.f32 %v5789_v24, %v2908_v50  ;;  %v4071_v8 = vpop.f32.mrb[18].mxu1 }
 0x6bf   : > { %v2920_v62 = vadd.f32 %v4071_v8, %v5789_v24  ;;  %v2911_v47 = vpop.f32.mrb[19].mxu1  ;;  %v2989_v59 = vadd.f32 %v2973_v7, %v2917_v37  ;;  %v2984_v37 = vunpack.c.h.bf16 %v5428_v13 }
 0x6c0   : > { %v2912_v52 = vadd.f32 %v5789_v24, %v2911_v47  ;;  %v2987_v49 = vadd.f32 %v2971_v30, %v2909_v28 }
 0x6c1   : > { %v2990_v2 = vadd.f32 %v2974_v54, %v2920_v62 }
 0x6c2   : > { %v2988_v29 = vadd.f32 %v2972_v60, %v2912_v52 }
 0x6c3   : > { %v3459_v9 = vpack.c.bf16 %v2990_v2, %v2989_v59 }
 0x6c4   : > { %v3454_v31 = vpack.c.bf16 %v2988_v29, %v2987_v49  ;;  %v4074_v10 = vpop.f32.mrb[20].mxu1 }
 0x6c5   : > { %3491 = vst [vmem:[%s5596_s1 + $0x8] sm:$0xff] %v3459_v9   ;;  %v2933_v32 = vadd.f32 %v4074_v10, %v5789_v24  ;;  %v2924_v33 = vpop.f32.mrb[21].mxu1 }
 0x6c6   : > { %3455 = vst [vmem:[%s5596_s1] sm:$0xff] %v3454_v31   ;;  %v2925_v34 = vadd.f32 %v5789_v24, %v2924_v33  ;;  %v4075_v38 = vpop.f32.mrb[22].mxu1 }
 0x6c7   : > { %v2936_v39 = vadd.f32 %v4075_v38, %v5789_v24  ;;  %v2927_v17 = vpop.f32.mrb[23].mxu1  ;;  %v2993_v27 = vadd.f32 %v2977_v18, %v2933_v32 }
 0x6c8   : > { %v2928_v25 = vadd.f32 %v5789_v24, %v2927_v17  ;;  %v2991_v26 = vadd.f32 %v2975_v35, %v2925_v34 }
 0x6c9   : > { %v2994_v40 = vadd.f32 %v2978_v4, %v2936_v39 }
 0x6ca   : > { %v2992_v44 = vadd.f32 %v2976_v23, %v2928_v25 }
 0x6cb   : > { %v3469_v14 = vpack.c.bf16 %v2994_v40, %v2993_v27 }
 0x6cc   : > { %v3464_v16 = vpack.c.bf16 %v2992_v44, %v2991_v26  ;;  %v4078_v55 = vpop.f32.mrb[24].mxu1 }
 0x6cd   : > { %3493 = vst [vmem:[%s5596_s1 + $0x18] sm:$0xff] %v3469_v14   ;;  %v2949_v56 = vadd.f32 %v4078_v55, %v5789_v24  ;;  %v2940_v12 = vpop.f32.mrb[25].mxu1 }
 0x6ce   : > { %3492 = vst [vmem:[%s5596_s1 + $0x10] sm:$0xff] %v3464_v16   ;;  %v2941_v61 = vadd.f32 %v5789_v24, %v2940_v12  ;;  %v4079_v41 = vpop.f32.mrb[26].mxu1 }
 0x6cf   : > { %v2952_v36 = vadd.f32 %v4079_v41, %v5789_v24  ;;  %v2943_v42 = vpop.f32.mrb[27].mxu1  ;;  %v2997_v51 = vadd.f32 %v2981_v45, %v2949_v56 }
 0x6d0   : > { %v2944_v20 = vadd.f32 %v5789_v24, %v2943_v42  ;;  %v2995_v58 = vadd.f32 %v2979_v48, %v2941_v61 }
 0x6d1   : > { %v2998_v53 = vadd.f32 %v2982_v57, %v2952_v36 }
 0x6d2   : > { %v2996_v0 = vadd.f32 %v2980_v63, %v2944_v20 }
 0x6d3   : > { %v3479_v11 = vpack.c.bf16 %v2998_v53, %v2997_v51 }
 0x6d4   : > { %v3474_v19 = vpack.c.bf16 %v2996_v0, %v2995_v58  ;;  %v4082_v1 = vpop.f32.mrb[28].mxu1 }
 0x6d5   : > { %3495 = vst [vmem:[%s5596_s1 + $0x28] sm:$0xff] %v3479_v11   ;;  %v2965_v21 = vadd.f32 %v4082_v1, %v5789_v24  ;;  %v2956_v43 = vpop.f32.mrb[29].mxu1 }
 0x6d6   : > { %3494 = vst [vmem:[%s5596_s1 + $0x20] sm:$0xff] %v3474_v19   ;;  %v2957_v6 = vadd.f32 %v5789_v24, %v2956_v43  ;;  %v4083_v46 = vpop.f32.mrb[30].mxu1 }
 0x6d7   : > { %v2968_v7 = vadd.f32 %v4083_v46, %v5789_v24  ;;  %v2959_v50 = vpop.f32.mrb[31].mxu1  ;;  %v3001_v15 = vadd.f32 %v2985_v5, %v2965_v21 }
 0x6d8   : > { %v2960_v54 = vadd.f32 %v5789_v24, %v2959_v50  ;;  %v2999_v30 = vadd.f32 %v2983_v22, %v2957_v6 }
 0x6d9   : > { %v3002_v28 = vadd.f32 %v2986_v3, %v2968_v7 }
 0x6da   : > { %v3000_v8 = vadd.f32 %v2984_v37, %v2960_v54 }
 0x6db   : > { %v3489_v60 = vpack.c.bf16 %v3002_v28, %v3001_v15 }
 0x6dc   : > { %v3484_v13 = vpack.c.bf16 %v3000_v8, %v2999_v30 }
 0x6dd   : > { %3497 = vst [vmem:[%s5596_s1 + $0x38] sm:$0xff] %v3489_v60  }
 0x6de   : > { %3496 = vst [vmem:[%s5596_s1 + $0x30] sm:$0xff] %v3484_v13  }
 0x6df   : > { %4698 = shalt.err (!%p4695_p0)
}
 0x6e0   : > { %s4699_s1 = scalar_lea.hbm %s5835_s25, 1024  ;;  %s4703_s26 = scalar_lea.hbm %s6043_s24, 4096 }
 0x6e1   : > { %p4700_p1 = scmp.ne.s32.totalorder %s5835_s25, %s4699_s1  ;;  %p4704_p4 = scmp.lt.u32.totalorder %s5835_s25, %s6043_s24 }
 0x6e2   : > { %p4705_p5 = scmp.lt.u32.totalorder %s4703_s26, %s4699_s1  ;;  %p4707_p8 = scmp.lt.u32.totalorder %s4699_s1, %s5835_s25 }
 0x6e3   : > { %p4701_p3 = pnand %p4700_p1, %p6044_p2 }
 0x6e4   : > { %p4706_p10 = por %p4705_p5, %p4704_p4 }
 0x6e5   : > { %p4702_p12 = pneg %p4701_p3 }
 0x6e6   : > { %p4708_p9 = por %p4707_p8, %p4706_p10 }
 0x6e8   : > { %p4709_p7 = pnand %p4708_p9, %p4702_p12 }
 0x6ea   : > { %4712 = shalt.err (!%p4709_p7)
}
 0x6eb   : > { %s4864_s21 = smov 64   ;;  %s4865_s11 = smov 4  }
 0x6ec   : > { %4246 = dma.vmem_to_hbm [thread:$0]  (%p6044_p2), %s5837_s5, 1024, %s5835_s25, %s3084_s29, %s4864_s21, %s4864_s21, %s4865_s11  }
 0x6ed PF: > { %s6045_s10 = sld [smem:[#allocation38_spill]]  ;;  %p4279_p6 = scmp.ge.s32.totalorder %s4847_s22, 2 }
 0x6ee   : > { %s3115_s9 = sand.u32 1, %s4819_s15  }
 0x6ef   : > { %s3116_s23 = scalar_lea.sflag [#allocation7], %s3115_s9 }
 0x6f3   : > { %p6046_p13 = scmp.ne.s32.totalorder %s6045_s10, 0 }
 0x6f5   : > { %p4269_p11 = pnand %p4279_p6, %p6046_p13 }
 0x6f7   : > { %4790 = dma.done.wait (!%p4269_p11), %s3116_s23, 1024  }
 0x6f8   : > { %4792 = vsyncadd (!%p4269_p11), %s3116_s23, 4294966272  ;;  %s30_s22 = sadd.s32 1, %s4847_s22   ;;  %s6048_s30 = sld [smem:[#allocation24_spill]] }
 0x6f9   : > { %p5870_p0 = scmp.ge.s32.totalorder %s30_s22, 6   ;;  %s6049_s10 = sld [smem:[#allocation25_spill]] }
 0x6fa   : > { %s6050_s19 = sld [smem:[#allocation26_spill]]  ;;  %s6051_s4 = smov %s5078_s12 }
 0x6fb   : > { %s6052_s5 = sld [smem:[#allocation37_spill]]  ;;  %s6053_s18 = sld [smem:[#allocation29_spill]] }
 0x6fc   : > { %s6054_s25 = sld [smem:[#allocation30_spill]]  ;;  %s6055_s20 = sld [smem:[#allocation32_spill]] }
 0x6fd   : > { %s6056_s21 = sld [smem:[#allocation33_spill]]  ;;  %s6057_s11 = smov %s6080_s2 }
 0x6fe   : > { %s6059_s13 = smov %s4815_s14  ;;  %s6060_s14 = smov %s6051_s4 }
 0x6ff   : > { %s6061_s15 = smov %s4823_s16  ;;  %s6062_s16 = smov %s4827_s17 }
 0x700   : > { %s6058_s12 = smov %s6050_s19  ;;  %29 = sbr.rel (!%p5870_p0) target bundleno = 25 (0x19), region = 173 }
 0x701   : > { %s6063_s17 = smov %s6052_s5 }
 0x702   : > { %s6064_s19 = smov %s6054_s25 }
 0x707   :  { %3121 = vsyncpa [#allocation6], 1 }
 0x708   :  { %3123 = vsyncpa [#allocation6 + $0x1], 1 }
 0x709   :  { %3124 = vsyncpa [#allocation9], 1 }
 0x70a   :  { %3126 = vsyncpa [#allocation9 + $0x1], 1 }
 0x70b   :  { %3127 = vsyncpa [#allocation12], 1 }
 0x70c   :  { %3128 = vsyncpa [#allocation15], 1 }
 0x70d   :  { %3129 = vsyncpa [#allocation7], 1 }
 0x70e   :  { %3131 = vsyncpa [#allocation7 + $0x1], 1 }

</bundles_post_ra>
